<compile_context>
chip_gen: v7x
topology: tpu7x:2x2x1
jax: 0.10.0
libtpu: 0.0.40
codegen_flags: <defaults>
</compile_context>

<pallas_src>
import functools

import jax
import jax.numpy as jnp
from jax import lax
from jax.experimental import pallas as pl
from jax.experimental.pallas import tpu as pltpu


HIDDEN = 50
LANE = 128
SUBLANE = 8


def _round_up(x, m):
    return (x + m - 1) // m * m


def _lstm_fc_kernel(T, Bp, Hp,
                    x_ref, wih_ref, whh_ref, b_ref, wfc_ref, bfc_ref,
                    out_ref, xg_ref):
    # ---- hoisted input projection: one (T*Bp, D) x (D, 4*Hp) MXU matmul ----
    # Bias is folded in here (broadcast once); nothing x-related remains in the loop.
    xg_ref[...] = (jnp.dot(x_ref[...], wih_ref[...],
                           preferred_element_type=jnp.float32)
                   + jnp.broadcast_to(b_ref[...], (T * Bp, 4 * Hp)))

    whh = whh_ref[...]                                    # (Hp, 4*Hp), held in vregs/VMEM

    def step(t, carry):
        h, c = carry
        row = pl.multiple_of(t * Bp, Bp)
        # Serial critical path per step: ONE MXU dot + gate elementwise math.
        gates = (xg_ref[pl.ds(row, Bp), :]
                 + jnp.dot(h, whh, preferred_element_type=jnp.float32))  # (Bp, 4*Hp)
        # Gate slices land exactly on vreg lane boundaries (Hp == 128).
        i_g = jax.nn.sigmoid(gates[:, 0 * Hp:1 * Hp])
        f_g = jax.nn.sigmoid(gates[:, 1 * Hp:2 * Hp])
        g_g = jnp.tanh(gates[:, 2 * Hp:3 * Hp])
        o_g = jax.nn.sigmoid(gates[:, 3 * Hp:4 * Hp])
        c_new = f_g * c + i_g * g_g
        h_new = o_g * jnp.tanh(c_new)
        return (h_new, c_new)

    h0 = jnp.zeros((Bp, Hp), jnp.float32)
    c0 = jnp.zeros((Bp, Hp), jnp.float32)
    unroll = True if T <= 16 else 8
    h_last, _ = lax.fori_loop(0, T, step, (h0, c0), unroll=unroll)

    # Fused Linear(50 -> 1), padded to a lane-dense 128-wide output store (col 0 real).
    out_ref[...] = (jnp.dot(h_last, wfc_ref[...], preferred_element_type=jnp.float32)
                    + bfc_ref[...])


@jax.jit
def stock_price_predictor(x, w_ih, w_hh, b_ih, b_hh, w_fc, b_fc):
    """x: (B, T, D) float32. Returns (B, 1) float32 (matches the PyTorch module)."""
    B, T, D = x.shape
    H = HIDDEN
    Hp = _round_up(H, LANE)                   # 128: each gate padded to a full vreg
    Bp = _round_up(max(B, SUBLANE), SUBLANE)  # batch padded to full sublanes

    # ---- layout prep (negligible XLA glue) ----
    # x -> (T*Bp, D): time-major, batch zero-padded, feature dim left UNPADDED.
    x_p = jnp.zeros((T, Bp, D), jnp.float32).at[:, :B, :].set(
        jnp.transpose(x, (1, 0, 2)))
    x_p = x_p.reshape(T * Bp, D)

    # PyTorch gate rows are [i, f, g, o], each (H, in). Pack per gate as (in, H),
    # zero-pad hidden to Hp lanes, place gate k at lanes [k*Hp, (k+1)*Hp).
    def pack_gates(w, in_dim, in_pad):
        wg = jnp.transpose(w.reshape(4, H, in_dim), (0, 2, 1))         # (4, in, H)
        wg = jnp.pad(wg, ((0, 0), (0, in_pad - in_dim), (0, Hp - H)))  # (4, in_pad, Hp)
        return jnp.transpose(wg, (1, 0, 2)).reshape(in_pad, 4 * Hp)    # (in_pad, 4*Hp)

    wih_p = pack_gates(w_ih, D, D)                                     # (D, 4*Hp)
    whh_p = pack_gates(w_hh, H, Hp)                                    # (Hp, 4*Hp)

    # Combined bias, per-gate padded to Hp lanes (pad lanes = 0 keeps padded h == 0).
    b_p = jnp.pad((b_ih + b_hh).reshape(4, H), ((0, 0), (0, Hp - H)))
    b_p = b_p.reshape(1, 4 * Hp)                                       # (1, 4*Hp)

    # Final Linear padded to a lane-dense 128-wide output; column 0 is the real one.
    wfc_p = jnp.zeros((Hp, LANE), jnp.float32).at[:H, 0].set(w_fc[0])  # (Hp, 128)
    bfc_p = jnp.zeros((1, LANE), jnp.float32).at[0, 0].set(b_fc[0])    # (1, 128)

    kernel = functools.partial(_lstm_fc_kernel, T, Bp, Hp)
    vmem_spec = pl.BlockSpec(memory_space=pltpu.MemorySpace.VMEM)

    # Explicit VMEM budget (whole problem resident): arrays + xg scratch + headroom.
    needed_bytes = 4 * (x_p.size + wih_p.size + whh_p.size + b_p.size
                        + wfc_p.size + bfc_p.size + Bp * LANE + T * Bp * 4 * Hp)
    vmem_limit = int(min(max(4 * needed_bytes, 32 * 1024 * 1024), 64 * 1024 * 1024))

    out_p = pl.pallas_call(
        kernel,
        out_shape=jax.ShapeDtypeStruct((Bp, LANE), jnp.float32),
        in_specs=[vmem_spec] * 6,
        out_specs=vmem_spec,
        scratch_shapes=[pltpu.VMEM((T * Bp, 4 * Hp), jnp.float32)],
        compiler_params=pltpu.CompilerParams(vmem_limit_bytes=vmem_limit),
    )(x_p, wih_p, whh_p, b_p, wfc_p, bfc_p)

    return out_p[:B, :1]


def reference_forward(x, w_ih, w_hh, b_ih, b_hh, w_fc, b_fc):
    """Pure-JAX reference mirroring torch.nn.LSTM + Linear semantics."""
    B, T, D = x.shape
    H = HIDDEN

    def step(carry, x_t):
        h, c = carry
        gates = x_t @ w_ih.T + b_ih + h @ w_hh.T + b_hh   # (B, 4H)
        i = jax.nn.sigmoid(gates[:, 0:H])
        f = jax.nn.sigmoid(gates[:, H:2 * H])
        g = jnp.tanh(gates[:, 2 * H:3 * H])
        o = jax.nn.sigmoid(gates[:, 3 * H:4 * H])
        c_new = f * c + i * g
        h_new = o * jnp.tanh(c_new)
        return (h_new, c_new), None

    h0 = jnp.zeros((B, H), jnp.float32)
    c0 = jnp.zeros((B, H), jnp.float32)
    (h_last, _), _ = lax.scan(step, (h0, c0), jnp.transpose(x, (1, 0, 2)))
    return h_last @ w_fc.T + b_fc


if __name__ == "__main__":
    B, T, D, H = 2, 8, 16, HIDDEN

    key = jax.random.PRNGKey(0)
    k_x, k_wih, k_whh, k_bih, k_bhh, k_wfc, k_bfc = jax.random.split(key, 7)

    # Deterministic synthetic params, PyTorch-style uniform(-1/sqrt(H), 1/sqrt(H)).
    stdv = 1.0 / jnp.sqrt(jnp.float32(H))
    w_ih = jax.random.uniform(k_wih, (4 * H, D), jnp.float32, -stdv, stdv)
    w_hh = jax.random.uniform(k_whh, (4 * H, H), jnp.float32, -stdv, stdv)
    b_ih = jax.random.uniform(k_bih, (4 * H,), jnp.float32, -stdv, stdv)
    b_hh = jax.random.uniform(k_bhh, (4 * H,), jnp.float32, -stdv, stdv)
    w_fc = jax.random.uniform(k_wfc, (1, H), jnp.float32, -stdv, stdv)
    b_fc = jax.random.uniform(k_bfc, (1,), jnp.float32, -stdv, stdv)

    x = jax.random.normal(k_x, (B, T, D), jnp.float32)

    out = stock_price_predictor(x, w_ih, w_hh, b_ih, b_hh, w_fc, b_fc)
    out = jax.block_until_ready(out)

    ref = reference_forward(x, w_ih, w_hh, b_ih, b_hh, w_fc, b_fc)
    assert out.shape == (B, 1), out.shape
    assert jnp.allclose(out, ref, atol=1e-5, rtol=1e-5), (out, ref)

    print("KERNEL_OK")
</pallas_src>

<mosaic_0001>
module attributes {stable_mosaic.version = 11 : i64} {
  func.func @_lstm_fc_kernel(%arg0: memref<64x16xf32, #tpu.memory_space<vmem>>, %arg1: memref<16x512xf32, #tpu.memory_space<vmem>>, %arg2: memref<128x512xf32, #tpu.memory_space<vmem>>, %arg3: memref<1x512xf32, #tpu.memory_space<vmem>>, %arg4: memref<128x128xf32, #tpu.memory_space<vmem>>, %arg5: memref<1x128xf32, #tpu.memory_space<vmem>>, %arg6: memref<8x128xf32, #tpu.memory_space<vmem>>, %arg7: memref<64x512xf32, #tpu.memory_space<vmem>>) attributes {dimension_semantics = [], scalar_prefetch = 0 : i64, scratch_operands = 1 : i64, tpu.core_type = #tpu.core_type<tc>} {
    %c0 = arith.constant 0 : index
    %c0_0 = arith.constant 0 : index
    %0 = vector.load %arg0[%c0, %c0_0] : memref<64x16xf32, #tpu.memory_space<vmem>>, vector<64x16xf32>
    %c0_1 = arith.constant 0 : index
    %c0_2 = arith.constant 0 : index
    %1 = vector.load %arg1[%c0_1, %c0_2] : memref<16x512xf32, #tpu.memory_space<vmem>>, vector<16x512xf32>
    %cst = arith.constant dense<0.000000e+00> : vector<64x512xf32>
    %2 = tpu.matmul %0, %1, %cst {dimension_numbers = #tpu.dot_dimension_numbers<[1], [0], [0], [1], [0, 0, 1, 1], [], []>} : vector<64x16xf32>, vector<16x512xf32>, vector<64x512xf32> -> vector<64x512xf32>
    %c0_3 = arith.constant 0 : index
    %c0_4 = arith.constant 0 : index
    %3 = vector.load %arg3[%c0_3, %c0_4] : memref<1x512xf32, #tpu.memory_space<vmem>>, vector<1x512xf32>
    %4 = vector.shape_cast %3 : vector<1x512xf32> to vector<1x512xf32>
    %5 = vector.broadcast %4 : vector<1x512xf32> to vector<64x512xf32>
    %6 = arith.addf %2, %5 : vector<64x512xf32>
    %c0_5 = arith.constant 0 : index
    %c0_6 = arith.constant 0 : index
    %7 = vector.load %arg7[%c0_5, %c0_6] : memref<64x512xf32, #tpu.memory_space<vmem>>, vector<64x512xf32>
    tpu.vector_store %arg7[%c0_5, %c0_6], %6 {strides = array<i32>} : memref<64x512xf32, #tpu.memory_space<vmem>>, vector<64x512xf32>,
    %c0_7 = arith.constant 0 : index
    %c0_8 = arith.constant 0 : index
    %8 = vector.load %arg2[%c0_7, %c0_8] : memref<128x512xf32, #tpu.memory_space<vmem>>, vector<128x512xf32>
    %cst_9 = arith.constant 0.000000e+00 : f32
    %9 = vector.broadcast %cst_9 : f32 to vector<8x128xf32>
    %cst_10 = arith.constant 0.000000e+00 : f32
    %10 = vector.broadcast %cst_10 : f32 to vector<8x128xf32>
    %c0_i32 = arith.constant 0 : i32
    %c8_i32 = arith.constant 8 : i32
    %11 = arith.muli %c0_i32, %c8_i32 : i32
    %12 = tpu.assume_multiple %11, 8 : i32
    %13 = arith.index_cast %12 : i32 to index
    %c0_11 = arith.constant 0 : index
    %14 = vector.load %arg7[%13, %c0_11] : memref<64x512xf32, #tpu.memory_space<vmem>>, vector<8x512xf32>
    %cst_12 = arith.constant dense<0.000000e+00> : vector<8x512xf32>
    %15 = tpu.matmul %9, %8, %cst_12 {dimension_numbers = #tpu.dot_dimension_numbers<[1], [0], [0], [1], [0, 0, 1, 1], [], []>} : vector<8x128xf32>, vector<128x512xf32>, vector<8x512xf32> -> vector<8x512xf32>
    %16 = arith.addf %14, %15 : vector<8x512xf32>
    %17 = vector.extract_strided_slice %16 {offsets = [0, 0], sizes = [8, 128], strides = [1, 1]} : vector<8x512xf32> to vector<8x128xf32>
    %18 = arith.negf %17 : vector<8x128xf32>
    %19 = math.exp %18 : vector<8x128xf32>
    %cst_13 = arith.constant 1.000000e+00 : f32
    %20 = vector.broadcast %cst_13 : f32 to vector<8x128xf32>
    %21 = arith.addf %20, %19 : vector<8x128xf32>
    %22 = arith.divf %20, %21 : vector<8x128xf32>
    %23 = vector.extract_strided_slice %16 {offsets = [0, 128], sizes = [8, 128], strides = [1, 1]} : vector<8x512xf32> to vector<8x128xf32>
    %24 = arith.negf %23 : vector<8x128xf32>
    %25 = math.exp %24 : vector<8x128xf32>
    %cst_14 = arith.constant 1.000000e+00 : f32
    %26 = vector.broadcast %cst_14 : f32 to vector<8x128xf32>
    %27 = arith.addf %26, %25 : vector<8x128xf32>
    %28 = arith.divf %26, %27 : vector<8x128xf32>
    %29 = vector.extract_strided_slice %16 {offsets = [0, 256], sizes = [8, 128], strides = [1, 1]} : vector<8x512xf32> to vector<8x128xf32>
    %30 = math.tanh %29 : vector<8x128xf32>
    %31 = vector.extract_strided_slice %16 {offsets = [0, 384], sizes = [8, 128], strides = [1, 1]} : vector<8x512xf32> to vector<8x128xf32>
    %32 = arith.negf %31 : vector<8x128xf32>
    %33 = math.exp %32 : vector<8x128xf32>
    %cst_15 = arith.constant 1.000000e+00 : f32
    %34 = vector.broadcast %cst_15 : f32 to vector<8x128xf32>
    %35 = arith.addf %34, %33 : vector<8x128xf32>
    %36 = arith.divf %34, %35 : vector<8x128xf32>
    %37 = arith.mulf %28, %10 : vector<8x128xf32>
    %38 = arith.mulf %22, %30 : vector<8x128xf32>
    %39 = arith.addf %37, %38 : vector<8x128xf32>
    %40 = math.tanh %39 : vector<8x128xf32>
    %41 = arith.mulf %36, %40 : vector<8x128xf32>
    %c1_i32 = arith.constant 1 : i32
    %c8_i32_16 = arith.constant 8 : i32
    %42 = arith.muli %c1_i32, %c8_i32_16 : i32
    %43 = tpu.assume_multiple %42, 8 : i32
    %44 = arith.index_cast %43 : i32 to index
    %c0_17 = arith.constant 0 : index
    %45 = vector.load %arg7[%44, %c0_17] : memref<64x512xf32, #tpu.memory_space<vmem>>, vector<8x512xf32>
    %cst_18 = arith.constant dense<0.000000e+00> : vector<8x512xf32>
    %46 = tpu.matmul %41, %8, %cst_18 {dimension_numbers = #tpu.dot_dimension_numbers<[1], [0], [0], [1], [0, 0, 1, 1], [], []>} : vector<8x128xf32>, vector<128x512xf32>, vector<8x512xf32> -> vector<8x512xf32>
    %47 = arith.addf %45, %46 : vector<8x512xf32>
    %48 = vector.extract_strided_slice %47 {offsets = [0, 0], sizes = [8, 128], strides = [1, 1]} : vector<8x512xf32> to vector<8x128xf32>
    %49 = arith.negf %48 : vector<8x128xf32>
    %50 = math.exp %49 : vector<8x128xf32>
    %cst_19 = arith.constant 1.000000e+00 : f32
    %51 = vector.broadcast %cst_19 : f32 to vector<8x128xf32>
    %52 = arith.addf %51, %50 : vector<8x128xf32>
    %53 = arith.divf %51, %52 : vector<8x128xf32>
    %54 = vector.extract_strided_slice %47 {offsets = [0, 128], sizes = [8, 128], strides = [1, 1]} : vector<8x512xf32> to vector<8x128xf32>
    %55 = arith.negf %54 : vector<8x128xf32>
    %56 = math.exp %55 : vector<8x128xf32>
    %cst_20 = arith.constant 1.000000e+00 : f32
    %57 = vector.broadcast %cst_20 : f32 to vector<8x128xf32>
    %58 = arith.addf %57, %56 : vector<8x128xf32>
    %59 = arith.divf %57, %58 : vector<8x128xf32>
    %60 = vector.extract_strided_slice %47 {offsets = [0, 256], sizes = [8, 128], strides = [1, 1]} : vector<8x512xf32> to vector<8x128xf32>
    %61 = math.tanh %60 : vector<8x128xf32>
    %62 = vector.extract_strided_slice %47 {offsets = [0, 384], sizes = [8, 128], strides = [1, 1]} : vector<8x512xf32> to vector<8x128xf32>
    %63 = arith.negf %62 : vector<8x128xf32>
    %64 = math.exp %63 : vector<8x128xf32>
    %cst_21 = arith.constant 1.000000e+00 : f32
    %65 = vector.broadcast %cst_21 : f32 to vector<8x128xf32>
    %66 = arith.addf %65, %64 : vector<8x128xf32>
    %67 = arith.divf %65, %66 : vector<8x128xf32>
    %68 = arith.mulf %59, %39 : vector<8x128xf32>
    %69 = arith.mulf %53, %61 : vector<8x128xf32>
    %70 = arith.addf %68, %69 : vector<8x128xf32>
    %71 = math.tanh %70 : vector<8x128xf32>
    %72 = arith.mulf %67, %71 : vector<8x128xf32>
    %c2_i32 = arith.constant 2 : i32
    %c8_i32_22 = arith.constant 8 : i32
    %73 = arith.muli %c2_i32, %c8_i32_22 : i32
    %74 = tpu.assume_multiple %73, 8 : i32
    %75 = arith.index_cast %74 : i32 to index
    %c0_23 = arith.constant 0 : index
    %76 = vector.load %arg7[%75, %c0_23] : memref<64x512xf32, #tpu.memory_space<vmem>>, vector<8x512xf32>
    %cst_24 = arith.constant dense<0.000000e+00> : vector<8x512xf32>
    %77 = tpu.matmul %72, %8, %cst_24 {dimension_numbers = #tpu.dot_dimension_numbers<[1], [0], [0], [1], [0, 0, 1, 1], [], []>} : vector<8x128xf32>, vector<128x512xf32>, vector<8x512xf32> -> vector<8x512xf32>
    %78 = arith.addf %76, %77 : vector<8x512xf32>
    %79 = vector.extract_strided_slice %78 {offsets = [0, 0], sizes = [8, 128], strides = [1, 1]} : vector<8x512xf32> to vector<8x128xf32>
    %80 = arith.negf %79 : vector<8x128xf32>
    %81 = math.exp %80 : vector<8x128xf32>
    %cst_25 = arith.constant 1.000000e+00 : f32
    %82 = vector.broadcast %cst_25 : f32 to vector<8x128xf32>
    %83 = arith.addf %82, %81 : vector<8x128xf32>
    %84 = arith.divf %82, %83 : vector<8x128xf32>
    %85 = vector.extract_strided_slice %78 {offsets = [0, 128], sizes = [8, 128], strides = [1, 1]} : vector<8x512xf32> to vector<8x128xf32>
    %86 = arith.negf %85 : vector<8x128xf32>
    %87 = math.exp %86 : vector<8x128xf32>
    %cst_26 = arith.constant 1.000000e+00 : f32
    %88 = vector.broadcast %cst_26 : f32 to vector<8x128xf32>
    %89 = arith.addf %88, %87 : vector<8x128xf32>
    %90 = arith.divf %88, %89 : vector<8x128xf32>
    %91 = vector.extract_strided_slice %78 {offsets = [0, 256], sizes = [8, 128], strides = [1, 1]} : vector<8x512xf32> to vector<8x128xf32>
    %92 = math.tanh %91 : vector<8x128xf32>
    %93 = vector.extract_strided_slice %78 {offsets = [0, 384], sizes = [8, 128], strides = [1, 1]} : vector<8x512xf32> to vector<8x128xf32>
    %94 = arith.negf %93 : vector<8x128xf32>
    %95 = math.exp %94 : vector<8x128xf32>
    %cst_27 = arith.constant 1.000000e+00 : f32
    %96 = vector.broadcast %cst_27 : f32 to vector<8x128xf32>
    %97 = arith.addf %96, %95 : vector<8x128xf32>
    %98 = arith.divf %96, %97 : vector<8x128xf32>
    %99 = arith.mulf %90, %70 : vector<8x128xf32>
    %100 = arith.mulf %84, %92 : vector<8x128xf32>
    %101 = arith.addf %99, %100 : vector<8x128xf32>
    %102 = math.tanh %101 : vector<8x128xf32>
    %103 = arith.mulf %98, %102 : vector<8x128xf32>
    %c3_i32 = arith.constant 3 : i32
    %c8_i32_28 = arith.constant 8 : i32
    %104 = arith.muli %c3_i32, %c8_i32_28 : i32
    %105 = tpu.assume_multiple %104, 8 : i32
    %106 = arith.index_cast %105 : i32 to index
    %c0_29 = arith.constant 0 : index
    %107 = vector.load %arg7[%106, %c0_29] : memref<64x512xf32, #tpu.memory_space<vmem>>, vector<8x512xf32>
    %cst_30 = arith.constant dense<0.000000e+00> : vector<8x512xf32>
    %108 = tpu.matmul %103, %8, %cst_30 {dimension_numbers = #tpu.dot_dimension_numbers<[1], [0], [0], [1], [0, 0, 1, 1], [], []>} : vector<8x128xf32>, vector<128x512xf32>, vector<8x512xf32> -> vector<8x512xf32>
    %109 = arith.addf %107, %108 : vector<8x512xf32>
    %110 = vector.extract_strided_slice %109 {offsets = [0, 0], sizes = [8, 128], strides = [1, 1]} : vector<8x512xf32> to vector<8x128xf32>
    %111 = arith.negf %110 : vector<8x128xf32>
    %112 = math.exp %111 : vector<8x128xf32>
    %cst_31 = arith.constant 1.000000e+00 : f32
    %113 = vector.broadcast %cst_31 : f32 to vector<8x128xf32>
    %114 = arith.addf %113, %112 : vector<8x128xf32>
    %115 = arith.divf %113, %114 : vector<8x128xf32>
    %116 = vector.extract_strided_slice %109 {offsets = [0, 128], sizes = [8, 128], strides = [1, 1]} : vector<8x512xf32> to vector<8x128xf32>
    %117 = arith.negf %116 : vector<8x128xf32>
    %118 = math.exp %117 : vector<8x128xf32>
    %cst_32 = arith.constant 1.000000e+00 : f32
    %119 = vector.broadcast %cst_32 : f32 to vector<8x128xf32>
    %120 = arith.addf %119, %118 : vector<8x128xf32>
    %121 = arith.divf %119, %120 : vector<8x128xf32>
    %122 = vector.extract_strided_slice %109 {offsets = [0, 256], sizes = [8, 128], strides = [1, 1]} : vector<8x512xf32> to vector<8x128xf32>
    %123 = math.tanh %122 : vector<8x128xf32>
    %124 = vector.extract_strided_slice %109 {offsets = [0, 384], sizes = [8, 128], strides = [1, 1]} : vector<8x512xf32> to vector<8x128xf32>
    %125 = arith.negf %124 : vector<8x128xf32>
    %126 = math.exp %125 : vector<8x128xf32>
    %cst_33 = arith.constant 1.000000e+00 : f32
    %127 = vector.broadcast %cst_33 : f32 to vector<8x128xf32>
    %128 = arith.addf %127, %126 : vector<8x128xf32>
    %129 = arith.divf %127, %128 : vector<8x128xf32>
    %130 = arith.mulf %121, %101 : vector<8x128xf32>
    %131 = arith.mulf %115, %123 : vector<8x128xf32>
    %132 = arith.addf %130, %131 : vector<8x128xf32>
    %133 = math.tanh %132 : vector<8x128xf32>
    %134 = arith.mulf %129, %133 : vector<8x128xf32>
    %c4_i32 = arith.constant 4 : i32
    %c8_i32_34 = arith.constant 8 : i32
    %135 = arith.muli %c4_i32, %c8_i32_34 : i32
    %136 = tpu.assume_multiple %135, 8 : i32
    %137 = arith.index_cast %136 : i32 to index
    %c0_35 = arith.constant 0 : index
    %138 = vector.load %arg7[%137, %c0_35] : memref<64x512xf32, #tpu.memory_space<vmem>>, vector<8x512xf32>
    %cst_36 = arith.constant dense<0.000000e+00> : vector<8x512xf32>
    %139 = tpu.matmul %134, %8, %cst_36 {dimension_numbers = #tpu.dot_dimension_numbers<[1], [0], [0], [1], [0, 0, 1, 1], [], []>} : vector<8x128xf32>, vector<128x512xf32>, vector<8x512xf32> -> vector<8x512xf32>
    %140 = arith.addf %138, %139 : vector<8x512xf32>
    %141 = vector.extract_strided_slice %140 {offsets = [0, 0], sizes = [8, 128], strides = [1, 1]} : vector<8x512xf32> to vector<8x128xf32>
    %142 = arith.negf %141 : vector<8x128xf32>
    %143 = math.exp %142 : vector<8x128xf32>
    %cst_37 = arith.constant 1.000000e+00 : f32
    %144 = vector.broadcast %cst_37 : f32 to vector<8x128xf32>
    %145 = arith.addf %144, %143 : vector<8x128xf32>
    %146 = arith.divf %144, %145 : vector<8x128xf32>
    %147 = vector.extract_strided_slice %140 {offsets = [0, 128], sizes = [8, 128], strides = [1, 1]} : vector<8x512xf32> to vector<8x128xf32>
    %148 = arith.negf %147 : vector<8x128xf32>
    %149 = math.exp %148 : vector<8x128xf32>
    %cst_38 = arith.constant 1.000000e+00 : f32
    %150 = vector.broadcast %cst_38 : f32 to vector<8x128xf32>
    %151 = arith.addf %150, %149 : vector<8x128xf32>
    %152 = arith.divf %150, %151 : vector<8x128xf32>
    %153 = vector.extract_strided_slice %140 {offsets = [0, 256], sizes = [8, 128], strides = [1, 1]} : vector<8x512xf32> to vector<8x128xf32>
    %154 = math.tanh %153 : vector<8x128xf32>
    %155 = vector.extract_strided_slice %140 {offsets = [0, 384], sizes = [8, 128], strides = [1, 1]} : vector<8x512xf32> to vector<8x128xf32>
    %156 = arith.negf %155 : vector<8x128xf32>
    %157 = math.exp %156 : vector<8x128xf32>
    %cst_39 = arith.constant 1.000000e+00 : f32
    %158 = vector.broadcast %cst_39 : f32 to vector<8x128xf32>
    %159 = arith.addf %158, %157 : vector<8x128xf32>
    %160 = arith.divf %158, %159 : vector<8x128xf32>
    %161 = arith.mulf %152, %132 : vector<8x128xf32>
    %162 = arith.mulf %146, %154 : vector<8x128xf32>
    %163 = arith.addf %161, %162 : vector<8x128xf32>
    %164 = math.tanh %163 : vector<8x128xf32>
    %165 = arith.mulf %160, %164 : vector<8x128xf32>
    %c5_i32 = arith.constant 5 : i32
    %c8_i32_40 = arith.constant 8 : i32
    %166 = arith.muli %c5_i32, %c8_i32_40 : i32
    %167 = tpu.assume_multiple %166, 8 : i32
    %168 = arith.index_cast %167 : i32 to index
    %c0_41 = arith.constant 0 : index
    %169 = vector.load %arg7[%168, %c0_41] : memref<64x512xf32, #tpu.memory_space<vmem>>, vector<8x512xf32>
    %cst_42 = arith.constant dense<0.000000e+00> : vector<8x512xf32>
    %170 = tpu.matmul %165, %8, %cst_42 {dimension_numbers = #tpu.dot_dimension_numbers<[1], [0], [0], [1], [0, 0, 1, 1], [], []>} : vector<8x128xf32>, vector<128x512xf32>, vector<8x512xf32> -> vector<8x512xf32>
    %171 = arith.addf %169, %170 : vector<8x512xf32>
    %172 = vector.extract_strided_slice %171 {offsets = [0, 0], sizes = [8, 128], strides = [1, 1]} : vector<8x512xf32> to vector<8x128xf32>
    %173 = arith.negf %172 : vector<8x128xf32>
    %174 = math.exp %173 : vector<8x128xf32>
    %cst_43 = arith.constant 1.000000e+00 : f32
    %175 = vector.broadcast %cst_43 : f32 to vector<8x128xf32>
    %176 = arith.addf %175, %174 : vector<8x128xf32>
    %177 = arith.divf %175, %176 : vector<8x128xf32>
    %178 = vector.extract_strided_slice %171 {offsets = [0, 128], sizes = [8, 128], strides = [1, 1]} : vector<8x512xf32> to vector<8x128xf32>
    %179 = arith.negf %178 : vector<8x128xf32>
    %180 = math.exp %179 : vector<8x128xf32>
    %cst_44 = arith.constant 1.000000e+00 : f32
    %181 = vector.broadcast %cst_44 : f32 to vector<8x128xf32>
    %182 = arith.addf %181, %180 : vector<8x128xf32>
    %183 = arith.divf %181, %182 : vector<8x128xf32>
    %184 = vector.extract_strided_slice %171 {offsets = [0, 256], sizes = [8, 128], strides = [1, 1]} : vector<8x512xf32> to vector<8x128xf32>
    %185 = math.tanh %184 : vector<8x128xf32>
    %186 = vector.extract_strided_slice %171 {offsets = [0, 384], sizes = [8, 128], strides = [1, 1]} : vector<8x512xf32> to vector<8x128xf32>
    %187 = arith.negf %186 : vector<8x128xf32>
    %188 = math.exp %187 : vector<8x128xf32>
    %cst_45 = arith.constant 1.000000e+00 : f32
    %189 = vector.broadcast %cst_45 : f32 to vector<8x128xf32>
    %190 = arith.addf %189, %188 : vector<8x128xf32>
    %191 = arith.divf %189, %190 : vector<8x128xf32>
    %192 = arith.mulf %183, %163 : vector<8x128xf32>
    %193 = arith.mulf %177, %185 : vector<8x128xf32>
    %194 = arith.addf %192, %193 : vector<8x128xf32>
    %195 = math.tanh %194 : vector<8x128xf32>
    %196 = arith.mulf %191, %195 : vector<8x128xf32>
    %c6_i32 = arith.constant 6 : i32
    %c8_i32_46 = arith.constant 8 : i32
    %197 = arith.muli %c6_i32, %c8_i32_46 : i32
    %198 = tpu.assume_multiple %197, 8 : i32
    %199 = arith.index_cast %198 : i32 to index
    %c0_47 = arith.constant 0 : index
    %200 = vector.load %arg7[%199, %c0_47] : memref<64x512xf32, #tpu.memory_space<vmem>>, vector<8x512xf32>
    %cst_48 = arith.constant dense<0.000000e+00> : vector<8x512xf32>
    %201 = tpu.matmul %196, %8, %cst_48 {dimension_numbers = #tpu.dot_dimension_numbers<[1], [0], [0], [1], [0, 0, 1, 1], [], []>} : vector<8x128xf32>, vector<128x512xf32>, vector<8x512xf32> -> vector<8x512xf32>
    %202 = arith.addf %200, %201 : vector<8x512xf32>
    %203 = vector.extract_strided_slice %202 {offsets = [0, 0], sizes = [8, 128], strides = [1, 1]} : vector<8x512xf32> to vector<8x128xf32>
    %204 = arith.negf %203 : vector<8x128xf32>
    %205 = math.exp %204 : vector<8x128xf32>
    %cst_49 = arith.constant 1.000000e+00 : f32
    %206 = vector.broadcast %cst_49 : f32 to vector<8x128xf32>
    %207 = arith.addf %206, %205 : vector<8x128xf32>
    %208 = arith.divf %206, %207 : vector<8x128xf32>
    %209 = vector.extract_strided_slice %202 {offsets = [0, 128], sizes = [8, 128], strides = [1, 1]} : vector<8x512xf32> to vector<8x128xf32>
    %210 = arith.negf %209 : vector<8x128xf32>
    %211 = math.exp %210 : vector<8x128xf32>
    %cst_50 = arith.constant 1.000000e+00 : f32
    %212 = vector.broadcast %cst_50 : f32 to vector<8x128xf32>
    %213 = arith.addf %212, %211 : vector<8x128xf32>
    %214 = arith.divf %212, %213 : vector<8x128xf32>
    %215 = vector.extract_strided_slice %202 {offsets = [0, 256], sizes = [8, 128], strides = [1, 1]} : vector<8x512xf32> to vector<8x128xf32>
    %216 = math.tanh %215 : vector<8x128xf32>
    %217 = vector.extract_strided_slice %202 {offsets = [0, 384], sizes = [8, 128], strides = [1, 1]} : vector<8x512xf32> to vector<8x128xf32>
    %218 = arith.negf %217 : vector<8x128xf32>
    %219 = math.exp %218 : vector<8x128xf32>
    %cst_51 = arith.constant 1.000000e+00 : f32
    %220 = vector.broadcast %cst_51 : f32 to vector<8x128xf32>
    %221 = arith.addf %220, %219 : vector<8x128xf32>
    %222 = arith.divf %220, %221 : vector<8x128xf32>
    %223 = arith.mulf %214, %194 : vector<8x128xf32>
    %224 = arith.mulf %208, %216 : vector<8x128xf32>
    %225 = arith.addf %223, %224 : vector<8x128xf32>
    %226 = math.tanh %225 : vector<8x128xf32>
    %227 = arith.mulf %222, %226 : vector<8x128xf32>
    %c7_i32 = arith.constant 7 : i32
    %c8_i32_52 = arith.constant 8 : i32
    %228 = arith.muli %c7_i32, %c8_i32_52 : i32
    %229 = tpu.assume_multiple %228, 8 : i32
    %230 = arith.index_cast %229 : i32 to index
    %c0_53 = arith.constant 0 : index
    %231 = vector.load %arg7[%230, %c0_53] : memref<64x512xf32, #tpu.memory_space<vmem>>, vector<8x512xf32>
    %cst_54 = arith.constant dense<0.000000e+00> : vector<8x512xf32>
    %232 = tpu.matmul %227, %8, %cst_54 {dimension_numbers = #tpu.dot_dimension_numbers<[1], [0], [0], [1], [0, 0, 1, 1], [], []>} : vector<8x128xf32>, vector<128x512xf32>, vector<8x512xf32> -> vector<8x512xf32>
    %233 = arith.addf %231, %232 : vector<8x512xf32>
    %234 = vector.extract_strided_slice %233 {offsets = [0, 0], sizes = [8, 128], strides = [1, 1]} : vector<8x512xf32> to vector<8x128xf32>
    %235 = arith.negf %234 : vector<8x128xf32>
    %236 = math.exp %235 : vector<8x128xf32>
    %cst_55 = arith.constant 1.000000e+00 : f32
    %237 = vector.broadcast %cst_55 : f32 to vector<8x128xf32>
    %238 = arith.addf %237, %236 : vector<8x128xf32>
    %239 = arith.divf %237, %238 : vector<8x128xf32>
    %240 = vector.extract_strided_slice %233 {offsets = [0, 128], sizes = [8, 128], strides = [1, 1]} : vector<8x512xf32> to vector<8x128xf32>
    %241 = arith.negf %240 : vector<8x128xf32>
    %242 = math.exp %241 : vector<8x128xf32>
    %cst_56 = arith.constant 1.000000e+00 : f32
    %243 = vector.broadcast %cst_56 : f32 to vector<8x128xf32>
    %244 = arith.addf %243, %242 : vector<8x128xf32>
    %245 = arith.divf %243, %244 : vector<8x128xf32>
    %246 = vector.extract_strided_slice %233 {offsets = [0, 256], sizes = [8, 128], strides = [1, 1]} : vector<8x512xf32> to vector<8x128xf32>
    %247 = math.tanh %246 : vector<8x128xf32>
    %248 = vector.extract_strided_slice %233 {offsets = [0, 384], sizes = [8, 128], strides = [1, 1]} : vector<8x512xf32> to vector<8x128xf32>
    %249 = arith.negf %248 : vector<8x128xf32>
    %250 = math.exp %249 : vector<8x128xf32>
    %cst_57 = arith.constant 1.000000e+00 : f32
    %251 = vector.broadcast %cst_57 : f32 to vector<8x128xf32>
    %252 = arith.addf %251, %250 : vector<8x128xf32>
    %253 = arith.divf %251, %252 : vector<8x128xf32>
    %254 = arith.mulf %245, %225 : vector<8x128xf32>
    %255 = arith.mulf %239, %247 : vector<8x128xf32>
    %256 = arith.addf %254, %255 : vector<8x128xf32>
    %257 = math.tanh %256 : vector<8x128xf32>
    %258 = arith.mulf %253, %257 : vector<8x128xf32>
    %c8_i32_58 = arith.constant 8 : i32
    %c0_59 = arith.constant 0 : index
    %c0_60 = arith.constant 0 : index
    %259 = vector.load %arg4[%c0_59, %c0_60] : memref<128x128xf32, #tpu.memory_space<vmem>>, vector<128x128xf32>
    %cst_61 = arith.constant dense<0.000000e+00> : vector<8x128xf32>
    %260 = tpu.matmul %258, %259, %cst_61 {dimension_numbers = #tpu.dot_dimension_numbers<[1], [0], [0], [1], [0, 0, 1, 1], [], []>} : vector<8x128xf32>, vector<128x128xf32>, vector<8x128xf32> -> vector<8x128xf32>
    %c0_62 = arith.constant 0 : index
    %c0_63 = arith.constant 0 : index
    %261 = vector.load %arg5[%c0_62, %c0_63] : memref<1x128xf32, #tpu.memory_space<vmem>>, vector<1x128xf32>
    %262 = vector.broadcast %261 : vector<1x128xf32> to vector<8x128xf32>
    %263 = arith.addf %260, %262 : vector<8x128xf32>
    %c0_64 = arith.constant 0 : index
    %c0_65 = arith.constant 0 : index
    %264 = vector.load %arg6[%c0_64, %c0_65] : memref<8x128xf32, #tpu.memory_space<vmem>>, vector<8x128xf32>
    tpu.vector_store %arg6[%c0_64, %c0_65], %263 {strides = array<i32>} : memref<8x128xf32, #tpu.memory_space<vmem>>, vector<8x128xf32>,
    return
  }
}

</mosaic_0001>

<bundles_post_ra>
// kernel: stock_price_predictor.1
= control target key start
LH: loop header
LB: loop body
LE: loop exit
PB: predicated region body
PF: predicated region fallthrough
CT: control target
= control target key end

     0   :  { %v2761_v3 = vmov 0.0   ;;  %vm61_vm0 = vcmask 130048   ;;  %vm2763_vm1 = vmmov 0   ;;  %s3535_s1 = inlined_call_operand.vmem [shape: f32[16,512], index: 1, kind: input, shape index: {}]   ;;  %s3536_s0 = inlined_call_operand.vmem [shape: f32[64,16], index: 0, kind: input, shape index: {}]   ;;  %s3537_s2 = inlined_call_operand.vmem [shape: f32[128,512], index: 2, kind: input, shape index: {}]   ;;  %s3538_s3 = inlined_call_operand.vmem [shape: f32[1,512], index: 3, kind: input, shape index: {}]   ;;  %s3539_s4 = inlined_call_operand.vmem [shape: f32[128,128], index: 4, kind: input, shape index: {}]   ;;  %s3540_s5 = inlined_call_operand.vmem [shape: f32[1,128], index: 5, kind: input, shape index: {}]   ;;  %s3541_s6 = inlined_call_operand.vmem [shape: f32[8,128], index: 6, kind: output, shape index: {}]  }
   0x1   :  { %v32_v0 = vld [vmem:[%s3535_s1 + $0x8] sm:$0xff]  ;;  %v34_v2 = vld [vmem:[%s3535_s1 + $0x18] sm:$0xff]  ;;  %150 = vmatprep.mubr.f32.mxu0 %v2761_v3  ;;  %263 = vmatprep.mubr.f32.mxu1 %v2761_v3  ;;  %v31_v6 = vld [vmem:[%s3535_s1] sm:$0xff] }
   0x2   :  { %v36_v1 = vld [vmem:[%s3535_s1 + $0x28] sm:$0xff]  ;;  %v38_v5 = vld [vmem:[%s3535_s1 + $0x38] sm:$0xff]  ;;  %v35_v7 = vld [vmem:[%s3535_s1 + $0x20] sm:$0xff] }
   0x3   :  { %v2022_v4 = vpack.c.bf16 %v36_v1, %v32_v0  ;;  %v2026_v8 = vpack.c.bf16 %v38_v5, %v34_v2  ;;  %v2024_v9 = vpack.c.bf16 %v35_v7, %v31_v6  ;;  %v33_v10 = vld [vmem:[%s3535_s1 + $0x10] sm:$0xff]  ;;  %v23_v12 = vld [vmem:[%s3536_s0] sm:$0xff]  ;;  %v345_v14 = vld [vmem:[%s3537_s2 + $0x8] sm:$0xff] }
   0x4   :  { %v37_v11 = vld [vmem:[%s3535_s1 + $0x30] sm:$0xff]  ;;  %v349_v15 = vld [vmem:[%s3537_s2 + $0x28] sm:$0xff]  ;;  %v347_v16 = vld [vmem:[%s3537_s2 + $0x18] sm:$0xff] }
   0x5   :  { %2023 = vmatprep.subr.bf16.mxu0 %v2022_v4  ;;  %v2028_v13 = vpack.c.bf16 %v37_v11, %v33_v10  ;;  %2027 = vmatprep.subr.bf16.mxu1 %v2026_v8  ;;  %v2837_v17 = vpack.c.bf16 %v349_v15, %v345_v14  ;;  %v351_v18 = vld [vmem:[%s3537_s2 + $0x38] sm:$0xff]  ;;  %v344_v19 = vld [vmem:[%s3537_s2] sm:$0xff]  ;;  %v346_v23 = vld [vmem:[%s3537_s2 + $0x10] sm:$0xff] }
   0x6   :  { %2025 = vmatpush1.bf16.msra.mxu0 %v2024_v9  ;;  %v348_v20 = vld [vmem:[%s3537_s2 + $0x20] sm:$0xff]  ;;  %v2848_v21 = vpack.c.bf16 %v351_v18, %v347_v16  ;;  %v350_v24 = vld [vmem:[%s3537_s2 + $0x30] sm:$0xff]  ;;  %v353_v26 = vld [vmem:[%s3537_s2 + $0x48] sm:$0xff] }
   0x7   :  { %2029 = vmatpush1.bf16.msra.mxu1 %v2028_v13  ;;  %v2850_v22 = vpack.c.bf16 %v348_v20, %v344_v19  ;;  %2031 = vmatprep.subr.bf16.mxu0 %v2837_v17  ;;  %v2859_v25 = vpack.c.bf16 %v350_v24, %v346_v23  ;;  %v357_v27 = vld [vmem:[%s3537_s2 + $0x68] sm:$0xff]  ;;  %v355_v28 = vld [vmem:[%s3537_s2 + $0x58] sm:$0xff]  ;;  %v352_v31 = vld [vmem:[%s3537_s2 + $0x40] sm:$0xff] }
   0x8   :  { %2063 = vmatprep.subr.bf16.mxu1 %v2848_v21  ;;  %v2872_v29 = vpack.c.bf16 %v357_v27, %v353_v26  ;;  %v359_v30 = vld [vmem:[%s3537_s2 + $0x78] sm:$0xff]  ;;  %v356_v32 = vld [vmem:[%s3537_s2 + $0x60] sm:$0xff]  ;;  %v24_v33 = vld [vmem:[%s3536_s0 + $0x8] sm:$0xff] }
   0x9   :  { %1929 = vmatmul.mubr.msk.f32.vlgmr.msra.gmra.mrb[0].mxu0 %vm61_vm0, %v23_v12  ;;  %v2888_v34 = vpack.c.bf16 %v359_v30, %v355_v28  ;;  %v2890_v35 = vpack.c.bf16 %v356_v32, %v352_v31  ;;  %v354_v36 = vld [vmem:[%s3537_s2 + $0x50] sm:$0xff]  ;;  %v361_v39 = vld [vmem:[%s3537_s2 + $0x88] sm:$0xff]  ;;  %v363_v41 = vld [vmem:[%s3537_s2 + $0x98] sm:$0xff] }
   0xa   :  { %1937 = vmatmul.mubr.msk.f32.vlgmr.msra.gmra.mrb[0].mxu1 %vm61_vm0, %v23_v12  ;;  %2033 = vmatpush1.bf16.msra.mxu0 %v2850_v22  ;;  %v358_v37 = vld [vmem:[%s3537_s2 + $0x70] sm:$0xff]  ;;  %v365_v40 = vld [vmem:[%s3537_s2 + $0xa8] sm:$0xff]  ;;  %v367_v43 = vld [vmem:[%s3537_s2 + $0xb8] sm:$0xff] }
   0xb   :  { %2065 = vmatpush1.bf16.msra.mxu1 %v2859_v25  ;;  %156 = vmatprep.mubr.f32.mxu0 %v2761_v3  ;;  %v2900_v38 = vpack.c.bf16 %v358_v37, %v354_v36  ;;  %v2913_v42 = vpack.c.bf16 %v365_v40, %v361_v39  ;;  %v360_v44 = vld [vmem:[%s3537_s2 + $0x80] sm:$0xff]  ;;  %v25_v46 = vld [vmem:[%s3536_s0 + $0x10] sm:$0xff]  ;;  %v2929_v47 = vpack.c.bf16 %v367_v43, %v363_v41  ;;  %v369_v51 = vld [vmem:[%s3537_s2 + $0xc8] sm:$0xff] }
   0xc   :  { %269 = vmatprep.mubr.f32.mxu1 %v2761_v3  ;;  %2035 = vmatprep.subr.bf16.mxu0 %v2872_v29  ;;  %v364_v45 = vld [vmem:[%s3537_s2 + $0xa0] sm:$0xff]  ;;  %v362_v48 = vld [vmem:[%s3537_s2 + $0x90] sm:$0xff]  ;;  %v373_v52 = vld [vmem:[%s3537_s2 + $0xe8] sm:$0xff] }
   0xd   :  { %1930 = vmatmul.mubr.msk.f32.gmra.mrb[2].mxu0 %vm61_vm0, %v24_v33  ;;  %2067 = vmatprep.subr.bf16.mxu1 %v2888_v34  ;;  %v366_v49 = vld [vmem:[%s3537_s2 + $0xb0] sm:$0xff]  ;;  %v2939_v50 = vpack.c.bf16 %v364_v45, %v360_v44  ;;  %v371_v53 = vld [vmem:[%s3537_s2 + $0xd8] sm:$0xff]  ;;  %v368_v56 = vld [vmem:[%s3537_s2 + $0xc0] sm:$0xff]  ;;  %v2965_v58 = vpack.c.bf16 %v373_v52, %v369_v51 }
   0xe   :  { %1938 = vmatmul.mubr.msk.f32.gmra.mrb[2].mxu1 %vm61_vm0, %v24_v33  ;;  %2037 = vmatpush1.bf16.msra.mxu0 %v2890_v35  ;;  %v2952_v54 = vpack.c.bf16 %v366_v49, %v362_v48  ;;  %v375_v55 = vld [vmem:[%s3537_s2 + $0xf8] sm:$0xff]  ;;  %v372_v57 = vld [vmem:[%s3537_s2 + $0xe0] sm:$0xff]  ;;  %v370_v59 = vld [vmem:[%s3537_s2 + $0xd0] sm:$0xff] }
   0xf   :  { %2069 = vmatpush1.bf16.msra.mxu1 %v2900_v38  ;;  %162 = vmatprep.mubr.f32.mxu0 %v2761_v3  ;;  %v374_v60 = vld [vmem:[%s3537_s2 + $0xf0] sm:$0xff]  ;;  %v2975_v61 = vpack.c.bf16 %v375_v55, %v371_v53  ;;  %v377_v62 = vld [vmem:[%s3537_s2 + $0x108] sm:$0xff]  ;;  %v26_v0 = vld [vmem:[%s3536_s0 + $0x18] sm:$0xff]  ;;  %v2988_v1 = vpack.c.bf16 %v372_v57, %v368_v56 }
  0x10   :  { %275 = vmatprep.mubr.f32.mxu1 %v2761_v3  ;;  %2039 = vmatprep.subr.bf16.mxu0 %v2913_v42  ;;  %v381_v63 = vld [vmem:[%s3537_s2 + $0x128] sm:$0xff]  ;;  %v379_v2 = vld [vmem:[%s3537_s2 + $0x118] sm:$0xff]  ;;  %v2998_v5 = vpack.c.bf16 %v374_v60, %v370_v59  ;;  %v376_v6 = vld [vmem:[%s3537_s2 + $0x100] sm:$0xff] }
  0x11   :  { %1931 = vmatmul.mubr.msk.f32.gmra.mrb[4].mxu0 %vm61_vm0, %v25_v46  ;;  %2071 = vmatprep.subr.bf16.mxu1 %v2929_v47  ;;  %v383_v4 = vld [vmem:[%s3537_s2 + $0x138] sm:$0xff]  ;;  %v380_v7 = vld [vmem:[%s3537_s2 + $0x120] sm:$0xff]  ;;  %v3008_v8 = vpack.c.bf16 %v381_v63, %v377_v62  ;;  %v378_v9 = vld [vmem:[%s3537_s2 + $0x110] sm:$0xff] }
  0x12   :  { %1939 = vmatmul.mubr.msk.f32.gmra.mrb[4].mxu1 %vm61_vm0, %v25_v46  ;;  %2041 = vmatpush1.bf16.msra.mxu0 %v2939_v50  ;;  %v382_v10 = vld [vmem:[%s3537_s2 + $0x130] sm:$0xff]  ;;  %v3018_v11 = vpack.c.bf16 %v383_v4, %v379_v2  ;;  %v385_v12 = vld [vmem:[%s3537_s2 + $0x148] sm:$0xff]  ;;  %v27_v14 = vld [vmem:[%s3536_s0 + $0x20] sm:$0xff]  ;;  %v3031_v15 = vpack.c.bf16 %v380_v7, %v376_v6  ;;  %v41_v7 = vlaneseq }
  0x13   :  { %2073 = vmatpush1.bf16.msra.mxu1 %v2952_v54  ;;  %168 = vmatprep.mubr.f32.mxu0 %v2761_v3  ;;  %v389_v13 = vld [vmem:[%s3537_s2 + $0x168] sm:$0xff]  ;;  %v387_v16 = vld [vmem:[%s3537_s2 + $0x158] sm:$0xff]  ;;  %v3041_v19 = vpack.c.bf16 %v382_v10, %v378_v9  ;;  %v384_v20 = vld [vmem:[%s3537_s2 + $0x140] sm:$0xff] }
  0x14   :  { %281 = vmatprep.mubr.f32.mxu1 %v2761_v3  ;;  %2043 = vmatprep.subr.bf16.mxu0 %v2965_v58  ;;  %v391_v18 = vld [vmem:[%s3537_s2 + $0x178] sm:$0xff]  ;;  %v388_v23 = vld [vmem:[%s3537_s2 + $0x160] sm:$0xff]  ;;  %v3051_v24 = vpack.c.bf16 %v389_v13, %v385_v12  ;;  %v386_v26 = vld [vmem:[%s3537_s2 + $0x150] sm:$0xff]  ;;  %v42_v9 = vshrl.u32 %v41_v7, 7 }
  0x15   :  { %1932 = vmatmul.mubr.msk.f32.gmra.mrb[6].mxu0 %vm61_vm0, %v26_v0  ;;  %2075 = vmatprep.subr.bf16.mxu1 %v2975_v61  ;;  %v390_v27 = vld [vmem:[%s3537_s2 + $0x170] sm:$0xff]  ;;  %v3061_v28 = vpack.c.bf16 %v391_v18, %v387_v16  ;;  %v393_v30 = vld [vmem:[%s3537_s2 + $0x188] sm:$0xff]  ;;  %v3074_v33 = vpack.c.bf16 %v388_v23, %v384_v20  ;;  %v395_v36 = vld [vmem:[%s3537_s2 + $0x198] sm:$0xff] }
  0x16   :  { %1940 = vmatmul.mubr.msk.f32.gmra.mrb[6].mxu1 %vm61_vm0, %v26_v0  ;;  %2045 = vmatpush1.bf16.msra.mxu0 %v2988_v1  ;;  %v397_v31 = vld [vmem:[%s3537_s2 + $0x1a8] sm:$0xff]  ;;  %v399_v37 = vld [vmem:[%s3537_s2 + $0x1b8] sm:$0xff]  ;;  %v3084_v39 = vpack.c.bf16 %v390_v27, %v386_v26  ;;  %v392_v40 = vld [vmem:[%s3537_s2 + $0x180] sm:$0xff]  ;;  %v43_v10 = vsub.s32 0, %v42_v9  ;;  %v47_v13 = vsub.s32 1, %v42_v9  ;;  %v55_v20 = vsub.s32 3, %v42_v9 }
  0x17   :  { %2077 = vmatpush1.bf16.msra.mxu1 %v2998_v5  ;;  %174 = vmatprep.mubr.f32.mxu0 %v2761_v3  ;;  %v28_v32 = vld [vmem:[%s3536_s0 + $0x28] sm:$0xff]  ;;  %v396_v41 = vld [vmem:[%s3537_s2 + $0x1a0] sm:$0xff]  ;;  %v3094_v43 = vpack.c.bf16 %v397_v31, %v393_v30  ;;  %v394_v44 = vld [vmem:[%s3537_s2 + $0x190] sm:$0xff]  ;;  %v3104_v46 = vpack.c.bf16 %v399_v37, %v395_v36 }
  0x18   :  { %287 = vmatprep.mubr.f32.mxu1 %v2761_v3  ;;  %2047 = vmatprep.subr.bf16.mxu0 %v3008_v8  ;;  %v398_v45 = vld [vmem:[%s3537_s2 + $0x1b0] sm:$0xff]  ;;  %v401_v48 = vld [vmem:[%s3537_s2 + $0x1c8] sm:$0xff]  ;;  %v3117_v52 = vpack.c.bf16 %v396_v41, %v392_v40  ;;  %v403_v53 = vld [vmem:[%s3537_s2 + $0x1d8] sm:$0xff]  ;;  %v51_v40 = vsub.s32 2, %v42_v9 }
  0x19   :  { %1933 = vmatmul.mubr.msk.f32.gmra.mrb[8].mxu0 %vm61_vm0, %v27_v14  ;;  %2079 = vmatprep.subr.bf16.mxu1 %v3018_v11  ;;  %v405_v49 = vld [vmem:[%s3537_s2 + $0x1e8] sm:$0xff]  ;;  %v29_v51 = vld [vmem:[%s3536_s0 + $0x30] sm:$0xff]  ;;  %v407_v55 = vld [vmem:[%s3537_s2 + $0x1f8] sm:$0xff]  ;;  %v3127_v56 = vpack.c.bf16 %v398_v45, %v394_v44 }
  0x1a   :  { %1941 = vmatmul.mubr.msk.f32.gmra.mrb[8].mxu1 %vm61_vm0, %v27_v14  ;;  %2049 = vmatpush1.bf16.msra.mxu0 %v3031_v15  ;;  %v400_v57 = vld [vmem:[%s3537_s2 + $0x1c0] sm:$0xff]  ;;  %v3137_v60 = vpack.c.bf16 %v405_v49, %v401_v48  ;;  %v402_v62 = vld [vmem:[%s3537_s2 + $0x1d0] sm:$0xff]  ;;  %v3147_v0 = vpack.c.bf16 %v407_v55, %v403_v53  ;;  %v30_v2 = vld [vmem:[%s3536_s0 + $0x38] sm:$0xff] }
  0x1b   :  { %2081 = vmatpush1.bf16.msra.mxu1 %v3041_v19  ;;  %180 = vmatprep.mubr.f32.mxu0 %v2761_v3  ;;  %v404_v59 = vld [vmem:[%s3537_s2 + $0x1e0] sm:$0xff]  ;;  %v406_v63 = vld [vmem:[%s3537_s2 + $0x1f0] sm:$0xff] }
  0x1c   :  { %293 = vmatprep.mubr.f32.mxu1 %v2761_v3  ;;  %2051 = vmatprep.subr.bf16.mxu0 %v3051_v24  ;;  %v3154_v4 = vpack.c.bf16 %v404_v59, %v400_v57  ;;  %v3158_v6 = vpack.c.bf16 %v406_v63, %v402_v62  ;;  %v39_v12 = vld [vmem:[%s3538_s3] sm:$0xf] }
  0x1d   :  { %1934 = vmatmul.mubr.msk.f32.gmra.mrb[10].mxu0 %vm61_vm0, %v28_v32  ;;  %2083 = vmatprep.subr.bf16.mxu1 %v3061_v28  ;;  %v3210_v14 = vrot.slane %v39_v12, %v43_v10  ;;  %v3212_v16 = vrot.slane %v39_v12, %v47_v13  ;;  %v3216_v37 = vrot.slane %v39_v12, %v55_v20 }
  0x1e   :  { %1942 = vmatmul.mubr.msk.f32.gmra.mrb[10].mxu1 %vm61_vm0, %v28_v32  ;;  %2053 = vmatpush1.bf16.msra.mxu0 %v3074_v33  ;;  %v3219_v44 = vrot.slane %v39_v12, %v51_v40 }
  0x1f   :  { %2085 = vmatpush1.bf16.msra.mxu1 %v3084_v39  ;;  %186 = vmatprep.mubr.f32.mxu0 %v2761_v3 }
  0x20   :  { %299 = vmatprep.mubr.f32.mxu1 %v2761_v3  ;;  %2055 = vmatprep.subr.bf16.mxu0 %v3094_v43 }
  0x21   :  { %1935 = vmatmul.mubr.msk.f32.gmra.mrb[12].mxu0 %vm61_vm0, %v29_v51  ;;  %2087 = vmatprep.subr.bf16.mxu1 %v3104_v46 }
  0x22   :  { %1943 = vmatmul.mubr.msk.f32.gmra.mrb[12].mxu1 %vm61_vm0, %v29_v51  ;;  %2057 = vmatpush1.bf16.msra.mxu0 %v3117_v52 }
  0x23   :  { %2089 = vmatpush1.bf16.msra.mxu1 %v3127_v56  ;;  %192 = vmatprep.mubr.f32.mxu0 %v2761_v3 }
  0x24   :  { %305 = vmatprep.mubr.f32.mxu1 %v2761_v3  ;;  %2059 = vmatprep.subr.bf16.mxu0 %v3137_v60 }
  0x25   :  { %1936 = vmatmul.mubr.msk.f32.gmra.mrb[14].mxu0 %vm61_vm0, %v30_v2  ;;  %2091 = vmatprep.subr.bf16.mxu1 %v3147_v0 }
  0x26   :  { %1944 = vmatmul.mubr.msk.f32.gmra.mrb[14].mxu1 %vm61_vm0, %v30_v2  ;;  %2061 = vmatpush1.bf16.msra.mxu0 %v3154_v4 }
  0x27   :  { %2093 = vmatpush1.bf16.msra.mxu1 %v3158_v6  ;;  %479 = vmatprep.mubr.f32.mxu0 %v2761_v3 }
  0x28   :  { %550 = vmatprep.mubr.f32.mxu1 %v2761_v3  ;;  %2095 = vmatprep.subr.bf16.mxu0 %v2837_v17 }
  0x29   :  { %480 = vmatmul.mubr.f32.vlgmr.msra.gmra.mrb[0].mxu0 %v2761_v3  ;;  %2127 = vmatprep.subr.bf16.mxu1 %v2848_v21 }
  0x2a   :  { %551 = vmatmul.mubr.f32.vlgmr.msra.gmra.mrb[0].mxu1 %v2761_v3  ;;  %2097 = vmatpush1.bf16.msra.mxu0 %v2850_v22 }
  0x2b   :  { %2129 = vmatpush1.bf16.msra.mxu1 %v2859_v25  ;;  %2099 = vmatprep.subr.bf16.mxu0 %v2872_v29 }
  0x2c   :  { %2131 = vmatprep.subr.bf16.mxu1 %v2888_v34  ;;  %656 = vmatprep.mubr.f32.mxu0 %v2761_v3 }
  0x2d   :  { %727 = vmatprep.mubr.f32.mxu1 %v2761_v3 }
  0x2e   :  { %2101 = vmatpush1.bf16.msra.mxu0 %v2890_v35 }
  0x2f   :  { %2133 = vmatpush1.bf16.msra.mxu1 %v2900_v38  ;;  %2103 = vmatprep.subr.bf16.mxu0 %v2913_v42 }
  0x30   :  { %2135 = vmatprep.subr.bf16.mxu1 %v2929_v47 }
  0x32   :  { %2105 = vmatpush1.bf16.msra.mxu0 %v2939_v50 }
  0x33   :  { %2137 = vmatpush1.bf16.msra.mxu1 %v2952_v54  ;;  %2107 = vmatprep.subr.bf16.mxu0 %v2965_v58 }
  0x34   :  { %2139 = vmatprep.subr.bf16.mxu1 %v2975_v61 }
  0x36   :  { %2109 = vmatpush1.bf16.msra.mxu0 %v2988_v1 }
  0x37   :  { %2141 = vmatpush1.bf16.msra.mxu1 %v2998_v5  ;;  %2111 = vmatprep.subr.bf16.mxu0 %v3008_v8 }
  0x38   :  { %2143 = vmatprep.subr.bf16.mxu1 %v3018_v11 }
  0x3a   :  { %2113 = vmatpush1.bf16.msra.mxu0 %v3031_v15 }
  0x3b   :  { %2145 = vmatpush1.bf16.msra.mxu1 %v3041_v19  ;;  %2115 = vmatprep.subr.bf16.mxu0 %v3051_v24 }
  0x3c   :  { %2147 = vmatprep.subr.bf16.mxu1 %v3061_v28 }
  0x3e   :  { %2117 = vmatpush1.bf16.msra.mxu0 %v3074_v33 }
  0x3f   :  { %2149 = vmatpush1.bf16.msra.mxu1 %v3084_v39  ;;  %2119 = vmatprep.subr.bf16.mxu0 %v3094_v43 }
  0x40   :  { %2151 = vmatprep.subr.bf16.mxu1 %v3104_v46 }
  0x42   :  { %2121 = vmatpush1.bf16.msra.mxu0 %v3117_v52 }
  0x43   :  { %2153 = vmatpush1.bf16.msra.mxu1 %v3127_v56  ;;  %2123 = vmatprep.subr.bf16.mxu0 %v3137_v60 }
  0x44   :  { %2155 = vmatprep.subr.bf16.mxu1 %v3147_v0 }
  0x46   :  { %2125 = vmatpush1.bf16.msra.mxu0 %v3154_v4 }
  0x47   :  { %2157 = vmatpush1.bf16.msra.mxu1 %v3158_v6  ;;  %2159 = vmatprep.subr.bf16.mxu0 %v2837_v17 }
  0x48   :  { %2191 = vmatprep.subr.bf16.mxu1 %v2848_v21 }
  0xfc   :  { %v481_v18 = vpop.f32.mrb[0].mxu0 }
  0xfd   :  { %v2566_v23 = vadd.f32 %v481_v18, %v3210_v14  ;;  %v552_v26 = vpop.f32.mrb[0].mxu1  ;;  %v483_v27 = vpop.f32.mrb[1].mxu0 }
  0xfe   :  { %v2567_v30 = vadd.f32 %v483_v27, %v3212_v16  ;;  %v554_v31 = vpop.f32.mrb[1].mxu1  ;;  %v2582_v48 = vadd.f32 %v552_v26, %v3219_v44 }
  0xff   :  { %v1945_v32 = vmul.f32 -1.442695, %v2566_v23  ;;  %v2583_v41 = vadd.f32 %v554_v31, %v3216_v37 }
 0x100   :  { %v1946_v36 = vmul.f32 -1.442695, %v2567_v30 }
 0x101   :  { %2633 = vpow2.f32 %v1945_v32  ;;  %v1947_v45 = vmul.f32 -1.442695, %v2583_v41 }
 0x102   :  { %2635 = vpow2.f32 %v1946_v36 }
 0x103   :  { %2637 = vpow2.f32 %v1947_v45 }
 0x104   :  { %2639 = vtanh.f32 %v2582_v48 }
 0x10b   :  { %v2634_v49 = vpop.eup %2633 }
 0x10c   :  { %v2636_v51 = vpop.eup %2635  ;;  %v564_v53 = vadd.f32 1.0, %v2634_v49 }
 0x10d   :  { %v570_v55 = vadd.f32 1.0, %v2636_v51  ;;  %v2638_v57 = vpop.eup %2637 }
 0x10e   :  { %2641 = vrcp.f32 %v564_v53  ;;  %v2640_v59 = vpop.eup %2639  ;;  %v577_v7 = vadd.f32 1.0, %v2638_v57 }
 0x10f   :  { %2643 = vrcp.f32 %v570_v55 }
 0x110   :  { %2645 = vrcp.f32 %v577_v7 }
 0x118   :  { %v2642_v62 = vpop.eup %2641 }
 0x119   :  { %v2644_v63 = vpop.eup %2643  ;;  %v581_v2 = vmul.f32 %v2642_v62, %v2640_v59 }
 0x11a   :  { %v580_v9 = vmul.f32 0.0, %v2644_v63  ;;  %v2646_v12 = vpop.eup %2645 }
 0x11c   :  { %v3222_v10 = vadd.f32 %v581_v2, %v580_v9 }
 0x11e   :  { %2647 = vtanh.f32 %v3222_v10 }
 0x128   :  { %v2648_v13 = vpop.eup %2647 }
 0x129   :  { %v584_v18 = vmul.f32 %v2648_v13, %v2646_v12 }
 0x12b   :  { %657 = vmatmul.mubr.f32.vlgmr.msra.gmra.mrb[2].mxu0 %v584_v18  ;;  %728 = vmatmul.mubr.f32.vlgmr.msra.gmra.mrb[2].mxu1 %v584_v18 }
 0x12c   :  { %2161 = vmatpush1.bf16.msra.mxu0 %v2850_v22  ;;  %2193 = vmatpush1.bf16.msra.mxu1 %v2859_v25 }
 0x12d   :  { %2163 = vmatprep.subr.bf16.mxu0 %v2872_v29  ;;  %2195 = vmatprep.subr.bf16.mxu1 %v2888_v34 }
 0x12e   :  { %833 = vmatprep.mubr.f32.mxu0 %v2761_v3  ;;  %904 = vmatprep.mubr.f32.mxu1 %v2761_v3 }
 0x130   :  { %2165 = vmatpush1.bf16.msra.mxu0 %v2890_v35  ;;  %2197 = vmatpush1.bf16.msra.mxu1 %v2900_v38 }
 0x131   :  { %2167 = vmatprep.subr.bf16.mxu0 %v2913_v42  ;;  %2199 = vmatprep.subr.bf16.mxu1 %v2929_v47 }
 0x134   :  { %2169 = vmatpush1.bf16.msra.mxu0 %v2939_v50  ;;  %2201 = vmatpush1.bf16.msra.mxu1 %v2952_v54 }
 0x135   :  { %2171 = vmatprep.subr.bf16.mxu0 %v2965_v58  ;;  %2203 = vmatprep.subr.bf16.mxu1 %v2975_v61 }
 0x138   :  { %2173 = vmatpush1.bf16.msra.mxu0 %v2988_v1  ;;  %2205 = vmatpush1.bf16.msra.mxu1 %v2998_v5 }
 0x139   :  { %2175 = vmatprep.subr.bf16.mxu0 %v3008_v8  ;;  %2207 = vmatprep.subr.bf16.mxu1 %v3018_v11 }
 0x13c   :  { %2177 = vmatpush1.bf16.msra.mxu0 %v3031_v15  ;;  %2209 = vmatpush1.bf16.msra.mxu1 %v3041_v19 }
 0x13d   :  { %2179 = vmatprep.subr.bf16.mxu0 %v3051_v24  ;;  %2211 = vmatprep.subr.bf16.mxu1 %v3061_v28 }
 0x140   :  { %2181 = vmatpush1.bf16.msra.mxu0 %v3074_v33  ;;  %2213 = vmatpush1.bf16.msra.mxu1 %v3084_v39 }
 0x141   :  { %2183 = vmatprep.subr.bf16.mxu0 %v3094_v43  ;;  %2215 = vmatprep.subr.bf16.mxu1 %v3104_v46 }
 0x144   :  { %2185 = vmatpush1.bf16.msra.mxu0 %v3117_v52  ;;  %2217 = vmatpush1.bf16.msra.mxu1 %v3127_v56 }
 0x145   :  { %2187 = vmatprep.subr.bf16.mxu0 %v3137_v60  ;;  %2219 = vmatprep.subr.bf16.mxu1 %v3147_v0 }
 0x148   :  { %2189 = vmatpush1.bf16.msra.mxu0 %v3154_v4  ;;  %2221 = vmatpush1.bf16.msra.mxu1 %v3158_v6 }
 0x149   :  { %2223 = vmatprep.subr.bf16.mxu0 %v2837_v17  ;;  %2255 = vmatprep.subr.bf16.mxu1 %v2848_v21 }
 0x1fe   :  { %v658_v20 = vpop.f32.mrb[2].mxu0  ;;  %v729_v23 = vpop.f32.mrb[2].mxu1 }
 0x1ff   :  { %v2568_v26 = vadd.f32 %v658_v20, %v3210_v14  ;;  %v660_v27 = vpop.f32.mrb[3].mxu0  ;;  %v731_v30 = vpop.f32.mrb[3].mxu1  ;;  %v2584_v45 = vadd.f32 %v729_v23, %v3219_v44 }
 0x200   :  { %v2569_v31 = vadd.f32 %v660_v27, %v3212_v16  ;;  %v2585_v40 = vadd.f32 %v731_v30, %v3216_v37 }
 0x201   :  { %v1948_v32 = vmul.f32 -1.442695, %v2568_v26 }
 0x202   :  { %v1949_v36 = vmul.f32 -1.442695, %v2569_v31  ;;  %v1950_v41 = vmul.f32 -1.442695, %v2585_v40 }
 0x203   :  { %2649 = vpow2.f32 %v1948_v32 }
 0x204   :  { %2651 = vpow2.f32 %v1949_v36 }
 0x205   :  { %2653 = vpow2.f32 %v1950_v41 }
 0x206   :  { %2655 = vtanh.f32 %v2584_v45 }
 0x20d   :  { %v2650_v48 = vpop.eup %2649 }
 0x20e   :  { %v2652_v49 = vpop.eup %2651  ;;  %v741_v51 = vadd.f32 1.0, %v2650_v48 }
 0x20f   :  { %v747_v53 = vadd.f32 1.0, %v2652_v49  ;;  %v2654_v55 = vpop.eup %2653 }
 0x210   :  { %2657 = vrcp.f32 %v741_v51  ;;  %v2656_v57 = vpop.eup %2655  ;;  %v754_v2 = vadd.f32 1.0, %v2654_v55 }
 0x211   :  { %2659 = vrcp.f32 %v747_v53 }
 0x212   :  { %2661 = vrcp.f32 %v754_v2 }
 0x21a   :  { %v2658_v59 = vpop.eup %2657 }
 0x21b   :  { %v2660_v62 = vpop.eup %2659  ;;  %v758_v63 = vmul.f32 %v2658_v59, %v2656_v57 }
 0x21c   :  { %v757_v7 = vmul.f32 %v2660_v62, %v3222_v10  ;;  %v2662_v12 = vpop.eup %2661 }
 0x21e   :  { %v3264_v9 = vadd.f32 %v758_v63, %v757_v7 }
 0x220   :  { %2663 = vtanh.f32 %v3264_v9 }
 0x22a   :  { %v2664_v13 = vpop.eup %2663 }
 0x22b   :  { %v761_v18 = vmul.f32 %v2664_v13, %v2662_v12 }
 0x22d   :  { %834 = vmatmul.mubr.f32.vlgmr.msra.gmra.mrb[4].mxu0 %v761_v18  ;;  %905 = vmatmul.mubr.f32.vlgmr.msra.gmra.mrb[4].mxu1 %v761_v18 }
 0x22e   :  { %2225 = vmatpush1.bf16.msra.mxu0 %v2850_v22  ;;  %2257 = vmatpush1.bf16.msra.mxu1 %v2859_v25 }
 0x22f   :  { %2227 = vmatprep.subr.bf16.mxu0 %v2872_v29  ;;  %2259 = vmatprep.subr.bf16.mxu1 %v2888_v34 }
 0x230   :  { %1010 = vmatprep.mubr.f32.mxu0 %v2761_v3  ;;  %1081 = vmatprep.mubr.f32.mxu1 %v2761_v3 }
 0x232   :  { %2229 = vmatpush1.bf16.msra.mxu0 %v2890_v35  ;;  %2261 = vmatpush1.bf16.msra.mxu1 %v2900_v38 }
 0x233   :  { %2231 = vmatprep.subr.bf16.mxu0 %v2913_v42  ;;  %2263 = vmatprep.subr.bf16.mxu1 %v2929_v47 }
 0x236   :  { %2233 = vmatpush1.bf16.msra.mxu0 %v2939_v50  ;;  %2265 = vmatpush1.bf16.msra.mxu1 %v2952_v54 }
 0x237   :  { %2235 = vmatprep.subr.bf16.mxu0 %v2965_v58  ;;  %2267 = vmatprep.subr.bf16.mxu1 %v2975_v61 }
 0x23a   :  { %2237 = vmatpush1.bf16.msra.mxu0 %v2988_v1  ;;  %2269 = vmatpush1.bf16.msra.mxu1 %v2998_v5 }
 0x23b   :  { %2239 = vmatprep.subr.bf16.mxu0 %v3008_v8  ;;  %2271 = vmatprep.subr.bf16.mxu1 %v3018_v11 }
 0x23e   :  { %2241 = vmatpush1.bf16.msra.mxu0 %v3031_v15  ;;  %2273 = vmatpush1.bf16.msra.mxu1 %v3041_v19 }
 0x23f   :  { %2243 = vmatprep.subr.bf16.mxu0 %v3051_v24  ;;  %2275 = vmatprep.subr.bf16.mxu1 %v3061_v28 }
 0x242   :  { %2245 = vmatpush1.bf16.msra.mxu0 %v3074_v33  ;;  %2277 = vmatpush1.bf16.msra.mxu1 %v3084_v39 }
 0x243   :  { %2247 = vmatprep.subr.bf16.mxu0 %v3094_v43  ;;  %2279 = vmatprep.subr.bf16.mxu1 %v3104_v46 }
 0x246   :  { %2249 = vmatpush1.bf16.msra.mxu0 %v3117_v52  ;;  %2281 = vmatpush1.bf16.msra.mxu1 %v3127_v56 }
 0x247   :  { %2251 = vmatprep.subr.bf16.mxu0 %v3137_v60  ;;  %2283 = vmatprep.subr.bf16.mxu1 %v3147_v0 }
 0x24a   :  { %2253 = vmatpush1.bf16.msra.mxu0 %v3154_v4  ;;  %2285 = vmatpush1.bf16.msra.mxu1 %v3158_v6 }
 0x24b   :  { %2287 = vmatprep.subr.bf16.mxu0 %v2837_v17  ;;  %2319 = vmatprep.subr.bf16.mxu1 %v2848_v21 }
 0x300   :  { %v835_v10 = vpop.f32.mrb[4].mxu0  ;;  %v906_v20 = vpop.f32.mrb[4].mxu1 }
 0x301   :  { %v2570_v23 = vadd.f32 %v835_v10, %v3210_v14  ;;  %v837_v26 = vpop.f32.mrb[5].mxu0  ;;  %v908_v27 = vpop.f32.mrb[5].mxu1  ;;  %v2586_v41 = vadd.f32 %v906_v20, %v3219_v44 }
 0x302   :  { %v2571_v30 = vadd.f32 %v837_v26, %v3212_v16  ;;  %v2587_v36 = vadd.f32 %v908_v27, %v3216_v37 }
 0x303   :  { %v1951_v31 = vmul.f32 -1.442695, %v2570_v23 }
 0x304   :  { %v1952_v32 = vmul.f32 -1.442695, %v2571_v30  ;;  %v1953_v40 = vmul.f32 -1.442695, %v2587_v36 }
 0x305   :  { %2665 = vpow2.f32 %v1951_v31 }
 0x306   :  { %2667 = vpow2.f32 %v1952_v32 }
 0x307   :  { %2669 = vpow2.f32 %v1953_v40 }
 0x308   :  { %2671 = vtanh.f32 %v2586_v41 }
 0x30f   :  { %v2666_v45 = vpop.eup %2665 }
 0x310   :  { %v2668_v48 = vpop.eup %2667  ;;  %v918_v49 = vadd.f32 1.0, %v2666_v45 }
 0x311   :  { %v924_v51 = vadd.f32 1.0, %v2668_v48  ;;  %v2670_v53 = vpop.eup %2669 }
 0x312   :  { %2673 = vrcp.f32 %v918_v49  ;;  %v2672_v55 = vpop.eup %2671  ;;  %v931_v63 = vadd.f32 1.0, %v2670_v53 }
 0x313   :  { %2675 = vrcp.f32 %v924_v51 }
 0x314   :  { %2677 = vrcp.f32 %v931_v63 }
 0x31c   :  { %v2674_v57 = vpop.eup %2673 }
 0x31d   :  { %v2676_v59 = vpop.eup %2675  ;;  %v935_v62 = vmul.f32 %v2674_v57, %v2672_v55 }
 0x31e   :  { %v934_v2 = vmul.f32 %v2676_v59, %v3264_v9  ;;  %v2678_v12 = vpop.eup %2677 }
 0x320   :  { %v3306_v7 = vadd.f32 %v935_v62, %v934_v2 }
 0x322   :  { %2679 = vtanh.f32 %v3306_v7 }
 0x32c   :  { %v2680_v13 = vpop.eup %2679 }
 0x32d   :  { %v938_v18 = vmul.f32 %v2680_v13, %v2678_v12 }
 0x32f   :  { %1011 = vmatmul.mubr.f32.vlgmr.msra.gmra.mrb[6].mxu0 %v938_v18  ;;  %1082 = vmatmul.mubr.f32.vlgmr.msra.gmra.mrb[6].mxu1 %v938_v18 }
 0x330   :  { %2289 = vmatpush1.bf16.msra.mxu0 %v2850_v22  ;;  %2321 = vmatpush1.bf16.msra.mxu1 %v2859_v25 }
 0x331   :  { %2291 = vmatprep.subr.bf16.mxu0 %v2872_v29  ;;  %2323 = vmatprep.subr.bf16.mxu1 %v2888_v34 }
 0x332   :  { %1187 = vmatprep.mubr.f32.mxu0 %v2761_v3  ;;  %1258 = vmatprep.mubr.f32.mxu1 %v2761_v3 }
 0x334   :  { %2293 = vmatpush1.bf16.msra.mxu0 %v2890_v35  ;;  %2325 = vmatpush1.bf16.msra.mxu1 %v2900_v38 }
 0x335   :  { %2295 = vmatprep.subr.bf16.mxu0 %v2913_v42  ;;  %2327 = vmatprep.subr.bf16.mxu1 %v2929_v47 }
 0x338   :  { %2297 = vmatpush1.bf16.msra.mxu0 %v2939_v50  ;;  %2329 = vmatpush1.bf16.msra.mxu1 %v2952_v54 }
 0x339   :  { %2299 = vmatprep.subr.bf16.mxu0 %v2965_v58  ;;  %2331 = vmatprep.subr.bf16.mxu1 %v2975_v61 }
 0x33c   :  { %2301 = vmatpush1.bf16.msra.mxu0 %v2988_v1  ;;  %2333 = vmatpush1.bf16.msra.mxu1 %v2998_v5 }
 0x33d   :  { %2303 = vmatprep.subr.bf16.mxu0 %v3008_v8  ;;  %2335 = vmatprep.subr.bf16.mxu1 %v3018_v11 }
 0x340   :  { %2305 = vmatpush1.bf16.msra.mxu0 %v3031_v15  ;;  %2337 = vmatpush1.bf16.msra.mxu1 %v3041_v19 }
 0x341   :  { %2307 = vmatprep.subr.bf16.mxu0 %v3051_v24  ;;  %2339 = vmatprep.subr.bf16.mxu1 %v3061_v28 }
 0x344   :  { %2309 = vmatpush1.bf16.msra.mxu0 %v3074_v33  ;;  %2341 = vmatpush1.bf16.msra.mxu1 %v3084_v39 }
 0x345   :  { %2311 = vmatprep.subr.bf16.mxu0 %v3094_v43  ;;  %2343 = vmatprep.subr.bf16.mxu1 %v3104_v46 }
 0x348   :  { %2313 = vmatpush1.bf16.msra.mxu0 %v3117_v52  ;;  %2345 = vmatpush1.bf16.msra.mxu1 %v3127_v56 }
 0x349   :  { %2315 = vmatprep.subr.bf16.mxu0 %v3137_v60  ;;  %2347 = vmatprep.subr.bf16.mxu1 %v3147_v0 }
 0x34c   :  { %2317 = vmatpush1.bf16.msra.mxu0 %v3154_v4  ;;  %2349 = vmatpush1.bf16.msra.mxu1 %v3158_v6 }
 0x34d   :  { %2351 = vmatprep.subr.bf16.mxu0 %v2837_v17  ;;  %2383 = vmatprep.subr.bf16.mxu1 %v2848_v21 }
 0x402   :  { %v1012_v9 = vpop.f32.mrb[6].mxu0  ;;  %v1083_v10 = vpop.f32.mrb[6].mxu1 }
 0x403   :  { %v2572_v20 = vadd.f32 %v1012_v9, %v3210_v14  ;;  %v1014_v23 = vpop.f32.mrb[7].mxu0  ;;  %v1085_v26 = vpop.f32.mrb[7].mxu1  ;;  %v2588_v40 = vadd.f32 %v1083_v10, %v3219_v44 }
 0x404   :  { %v2573_v27 = vadd.f32 %v1014_v23, %v3212_v16  ;;  %v2589_v32 = vadd.f32 %v1085_v26, %v3216_v37 }
 0x405   :  { %v1954_v30 = vmul.f32 -1.442695, %v2572_v20 }
 0x406   :  { %v1955_v31 = vmul.f32 -1.442695, %v2573_v27  ;;  %v1956_v36 = vmul.f32 -1.442695, %v2589_v32 }
 0x407   :  { %2681 = vpow2.f32 %v1954_v30 }
 0x408   :  { %2683 = vpow2.f32 %v1955_v31 }
 0x409   :  { %2685 = vpow2.f32 %v1956_v36 }
 0x40a   :  { %2687 = vtanh.f32 %v2588_v40 }
 0x411   :  { %v2682_v41 = vpop.eup %2681 }
 0x412   :  { %v2684_v45 = vpop.eup %2683  ;;  %v1095_v48 = vadd.f32 1.0, %v2682_v41 }
 0x413   :  { %v1101_v49 = vadd.f32 1.0, %v2684_v45  ;;  %v2686_v51 = vpop.eup %2685 }
 0x414   :  { %2689 = vrcp.f32 %v1095_v48  ;;  %v2688_v53 = vpop.eup %2687  ;;  %v1108_v62 = vadd.f32 1.0, %v2686_v51 }
 0x415   :  { %2691 = vrcp.f32 %v1101_v49 }
 0x416   :  { %2693 = vrcp.f32 %v1108_v62 }
 0x41e   :  { %v2690_v55 = vpop.eup %2689 }
 0x41f   :  { %v2692_v57 = vpop.eup %2691  ;;  %v1112_v59 = vmul.f32 %v2690_v55, %v2688_v53 }
 0x420   :  { %v1111_v63 = vmul.f32 %v2692_v57, %v3306_v7  ;;  %v2694_v12 = vpop.eup %2693 }
 0x422   :  { %v3348_v2 = vadd.f32 %v1112_v59, %v1111_v63 }
 0x424   :  { %2695 = vtanh.f32 %v3348_v2 }
 0x42e   :  { %v2696_v13 = vpop.eup %2695 }
 0x42f   :  { %v1115_v18 = vmul.f32 %v2696_v13, %v2694_v12 }
 0x431   :  { %1188 = vmatmul.mubr.f32.vlgmr.msra.gmra.mrb[8].mxu0 %v1115_v18  ;;  %1259 = vmatmul.mubr.f32.vlgmr.msra.gmra.mrb[8].mxu1 %v1115_v18 }
 0x432   :  { %2353 = vmatpush1.bf16.msra.mxu0 %v2850_v22  ;;  %2385 = vmatpush1.bf16.msra.mxu1 %v2859_v25 }
 0x433   :  { %2355 = vmatprep.subr.bf16.mxu0 %v2872_v29  ;;  %2387 = vmatprep.subr.bf16.mxu1 %v2888_v34 }
 0x434   :  { %1364 = vmatprep.mubr.f32.mxu0 %v2761_v3  ;;  %1435 = vmatprep.mubr.f32.mxu1 %v2761_v3 }
 0x436   :  { %2357 = vmatpush1.bf16.msra.mxu0 %v2890_v35  ;;  %2389 = vmatpush1.bf16.msra.mxu1 %v2900_v38 }
 0x437   :  { %2359 = vmatprep.subr.bf16.mxu0 %v2913_v42  ;;  %2391 = vmatprep.subr.bf16.mxu1 %v2929_v47 }
 0x43a   :  { %2361 = vmatpush1.bf16.msra.mxu0 %v2939_v50  ;;  %2393 = vmatpush1.bf16.msra.mxu1 %v2952_v54 }
 0x43b   :  { %2363 = vmatprep.subr.bf16.mxu0 %v2965_v58  ;;  %2395 = vmatprep.subr.bf16.mxu1 %v2975_v61 }
 0x43e   :  { %2365 = vmatpush1.bf16.msra.mxu0 %v2988_v1  ;;  %2397 = vmatpush1.bf16.msra.mxu1 %v2998_v5 }
 0x43f   :  { %2367 = vmatprep.subr.bf16.mxu0 %v3008_v8  ;;  %2399 = vmatprep.subr.bf16.mxu1 %v3018_v11 }
 0x442   :  { %2369 = vmatpush1.bf16.msra.mxu0 %v3031_v15  ;;  %2401 = vmatpush1.bf16.msra.mxu1 %v3041_v19 }
 0x443   :  { %2371 = vmatprep.subr.bf16.mxu0 %v3051_v24  ;;  %2403 = vmatprep.subr.bf16.mxu1 %v3061_v28 }
 0x446   :  { %2373 = vmatpush1.bf16.msra.mxu0 %v3074_v33  ;;  %2405 = vmatpush1.bf16.msra.mxu1 %v3084_v39 }
 0x447   :  { %2375 = vmatprep.subr.bf16.mxu0 %v3094_v43  ;;  %2407 = vmatprep.subr.bf16.mxu1 %v3104_v46 }
 0x44a   :  { %2377 = vmatpush1.bf16.msra.mxu0 %v3117_v52  ;;  %2409 = vmatpush1.bf16.msra.mxu1 %v3127_v56 }
 0x44b   :  { %2379 = vmatprep.subr.bf16.mxu0 %v3137_v60  ;;  %2411 = vmatprep.subr.bf16.mxu1 %v3147_v0 }
 0x44e   :  { %2381 = vmatpush1.bf16.msra.mxu0 %v3154_v4  ;;  %2413 = vmatpush1.bf16.msra.mxu1 %v3158_v6 }
 0x44f   :  { %2415 = vmatprep.subr.bf16.mxu0 %v2837_v17  ;;  %2447 = vmatprep.subr.bf16.mxu1 %v2848_v21 }
 0x504   :  { %v1189_v7 = vpop.f32.mrb[8].mxu0  ;;  %v1260_v9 = vpop.f32.mrb[8].mxu1 }
 0x505   :  { %v2574_v10 = vadd.f32 %v1189_v7, %v3210_v14  ;;  %v1191_v20 = vpop.f32.mrb[9].mxu0  ;;  %v1262_v23 = vpop.f32.mrb[9].mxu1  ;;  %v2590_v36 = vadd.f32 %v1260_v9, %v3219_v44 }
 0x506   :  { %v2575_v26 = vadd.f32 %v1191_v20, %v3212_v16  ;;  %v2591_v31 = vadd.f32 %v1262_v23, %v3216_v37 }
 0x507   :  { %v1957_v27 = vmul.f32 -1.442695, %v2574_v10 }
 0x508   :  { %v1958_v30 = vmul.f32 -1.442695, %v2575_v26  ;;  %v1959_v32 = vmul.f32 -1.442695, %v2591_v31 }
 0x509   :  { %2697 = vpow2.f32 %v1957_v27 }
 0x50a   :  { %2699 = vpow2.f32 %v1958_v30 }
 0x50b   :  { %2701 = vpow2.f32 %v1959_v32 }
 0x50c   :  { %2703 = vtanh.f32 %v2590_v36 }
 0x513   :  { %v2698_v40 = vpop.eup %2697 }
 0x514   :  { %v2700_v41 = vpop.eup %2699  ;;  %v1272_v45 = vadd.f32 1.0, %v2698_v40 }
 0x515   :  { %v1278_v48 = vadd.f32 1.0, %v2700_v41  ;;  %v2702_v49 = vpop.eup %2701 }
 0x516   :  { %2705 = vrcp.f32 %v1272_v45  ;;  %v2704_v51 = vpop.eup %2703  ;;  %v1285_v59 = vadd.f32 1.0, %v2702_v49 }
 0x517   :  { %2707 = vrcp.f32 %v1278_v48 }
 0x518   :  { %2709 = vrcp.f32 %v1285_v59 }
 0x520   :  { %v2706_v53 = vpop.eup %2705 }
 0x521   :  { %v2708_v55 = vpop.eup %2707  ;;  %v1289_v57 = vmul.f32 %v2706_v53, %v2704_v51 }
 0x522   :  { %v1288_v62 = vmul.f32 %v2708_v55, %v3348_v2  ;;  %v2710_v12 = vpop.eup %2709 }
 0x524   :  { %v3390_v63 = vadd.f32 %v1289_v57, %v1288_v62 }
 0x526   :  { %2711 = vtanh.f32 %v3390_v63 }
 0x530   :  { %v2712_v13 = vpop.eup %2711 }
 0x531   :  { %v1292_v18 = vmul.f32 %v2712_v13, %v2710_v12  ;;  %v1827_v13 = vld [vmem:[%s3539_s4 + $0x18] sm:$0xff] }
 0x533   :  { %1365 = vmatmul.mubr.f32.vlgmr.msra.gmra.mrb[10].mxu0 %v1292_v18  ;;  %1436 = vmatmul.mubr.f32.vlgmr.msra.gmra.mrb[10].mxu1 %v1292_v18 }
 0x534   :  { %2417 = vmatpush1.bf16.msra.mxu0 %v2850_v22  ;;  %2449 = vmatpush1.bf16.msra.mxu1 %v2859_v25 }
 0x535   :  { %2419 = vmatprep.subr.bf16.mxu0 %v2872_v29  ;;  %2451 = vmatprep.subr.bf16.mxu1 %v2888_v34 }
 0x536   :  { %1541 = vmatprep.mubr.f32.mxu0 %v2761_v3  ;;  %1612 = vmatprep.mubr.f32.mxu1 %v2761_v3 }
 0x538   :  { %2421 = vmatpush1.bf16.msra.mxu0 %v2890_v35  ;;  %2453 = vmatpush1.bf16.msra.mxu1 %v2900_v38 }
 0x539   :  { %2423 = vmatprep.subr.bf16.mxu0 %v2913_v42  ;;  %2455 = vmatprep.subr.bf16.mxu1 %v2929_v47 }
 0x53c   :  { %2425 = vmatpush1.bf16.msra.mxu0 %v2939_v50  ;;  %2457 = vmatpush1.bf16.msra.mxu1 %v2952_v54 }
 0x53d   :  { %2427 = vmatprep.subr.bf16.mxu0 %v2965_v58  ;;  %2459 = vmatprep.subr.bf16.mxu1 %v2975_v61 }
 0x540   :  { %2429 = vmatpush1.bf16.msra.mxu0 %v2988_v1  ;;  %2461 = vmatpush1.bf16.msra.mxu1 %v2998_v5 }
 0x541   :  { %2431 = vmatprep.subr.bf16.mxu0 %v3008_v8  ;;  %2463 = vmatprep.subr.bf16.mxu1 %v3018_v11 }
 0x544   :  { %2433 = vmatpush1.bf16.msra.mxu0 %v3031_v15  ;;  %2465 = vmatpush1.bf16.msra.mxu1 %v3041_v19 }
 0x545   :  { %2435 = vmatprep.subr.bf16.mxu0 %v3051_v24  ;;  %2467 = vmatprep.subr.bf16.mxu1 %v3061_v28 }
 0x548   :  { %2437 = vmatpush1.bf16.msra.mxu0 %v3074_v33  ;;  %2469 = vmatpush1.bf16.msra.mxu1 %v3084_v39 }
 0x549   :  { %2439 = vmatprep.subr.bf16.mxu0 %v3094_v43  ;;  %2471 = vmatprep.subr.bf16.mxu1 %v3104_v46 }
 0x54c   :  { %2441 = vmatpush1.bf16.msra.mxu0 %v3117_v52  ;;  %2473 = vmatpush1.bf16.msra.mxu1 %v3127_v56 }
 0x54d   :  { %2443 = vmatprep.subr.bf16.mxu0 %v3137_v60  ;;  %2475 = vmatprep.subr.bf16.mxu1 %v3147_v0 }
 0x550   :  { %2445 = vmatpush1.bf16.msra.mxu0 %v3154_v4  ;;  %2477 = vmatpush1.bf16.msra.mxu1 %v3158_v6 }
 0x551   :  { %2479 = vmatprep.subr.bf16.mxu0 %v2837_v17  ;;  %2511 = vmatprep.subr.bf16.mxu1 %v2848_v21 }
 0x606   :  { %v1366_v2 = vpop.f32.mrb[10].mxu0  ;;  %v1437_v7 = vpop.f32.mrb[10].mxu1 }
 0x607   :  { %v2576_v9 = vadd.f32 %v1366_v2, %v3210_v14  ;;  %v1368_v10 = vpop.f32.mrb[11].mxu0  ;;  %v1439_v20 = vpop.f32.mrb[11].mxu1  ;;  %v2592_v32 = vadd.f32 %v1437_v7, %v3219_v44  ;;  %v1828_v2 = vld [vmem:[%s3539_s4 + $0x20] sm:$0xff]  ;;  %v1829_v7 = vld [vmem:[%s3539_s4 + $0x28] sm:$0xff] }
 0x608   :  { %v2577_v23 = vadd.f32 %v1368_v10, %v3212_v16  ;;  %v2593_v30 = vadd.f32 %v1439_v20, %v3216_v37  ;;  %v1830_v10 = vld [vmem:[%s3539_s4 + $0x30] sm:$0xff]  ;;  %v1831_v20 = vld [vmem:[%s3539_s4 + $0x38] sm:$0xff] }
 0x609   :  { %v1960_v26 = vmul.f32 -1.442695, %v2576_v9  ;;  %v2549_v9 = vpack.c.bf16 %v1829_v7, %v1828_v2 }
 0x60a   :  { %v1961_v27 = vmul.f32 -1.442695, %v2577_v23  ;;  %v1962_v31 = vmul.f32 -1.442695, %v2593_v30  ;;  %v2552_v23 = vpack.c.bf16 %v1831_v20, %v1830_v10 }
 0x60b   :  { %2713 = vpow2.f32 %v1960_v26  ;;  %v1832_v26 = vld [vmem:[%s3539_s4 + $0x40] sm:$0xff] }
 0x60c   :  { %2715 = vpow2.f32 %v1961_v27  ;;  %v1833_v27 = vld [vmem:[%s3539_s4 + $0x48] sm:$0xff] }
 0x60d   :  { %2717 = vpow2.f32 %v1962_v31  ;;  %v2555_v30 = vpack.c.bf16 %v1833_v27, %v1832_v26  ;;  %v1834_v31 = vld [vmem:[%s3539_s4 + $0x50] sm:$0xff] }
 0x60e   :  { %2719 = vtanh.f32 %v2592_v32  ;;  %v1835_v32 = vld [vmem:[%s3539_s4 + $0x58] sm:$0xff] }
 0x615   :  { %v2714_v17 = vpop.eup %2713 }
 0x616   :  { %v2716_v36 = vpop.eup %2715  ;;  %v1449_v21 = vadd.f32 1.0, %v2714_v17  ;;  %v1836_v17 = vld [vmem:[%s3539_s4 + $0x60] sm:$0xff] }
 0x617   :  { %v1455_v40 = vadd.f32 1.0, %v2716_v36  ;;  %v2718_v41 = vpop.eup %2717  ;;  %v2558_v36 = vpack.c.bf16 %v1835_v32, %v1834_v31 }
 0x618   :  { %2721 = vrcp.f32 %v1449_v21  ;;  %v2720_v45 = vpop.eup %2719  ;;  %v1462_v53 = vadd.f32 1.0, %v2718_v41  ;;  %v1837_v21 = vld [vmem:[%s3539_s4 + $0x68] sm:$0xff]  ;;  %v1838_v41 = vld [vmem:[%s3539_s4 + $0x70] sm:$0xff] }
 0x619   :  { %2723 = vrcp.f32 %v1455_v40  ;;  %v2561_v40 = vpack.c.bf16 %v1837_v21, %v1836_v17 }
 0x61a   :  { %2725 = vrcp.f32 %v1462_v53 }
 0x622   :  { %v2722_v48 = vpop.eup %2721 }
 0x623   :  { %v2724_v49 = vpop.eup %2723  ;;  %v1466_v51 = vmul.f32 %v2722_v48, %v2720_v45  ;;  %v1839_v45 = vld [vmem:[%s3539_s4 + $0x78] sm:$0xff] }
 0x624   :  { %v1465_v55 = vmul.f32 %v2724_v49, %v3390_v63  ;;  %v2726_v59 = vpop.eup %2725  ;;  %v1826_v63 = vld [vmem:[%s3539_s4 + $0x10] sm:$0xff]  ;;  %v2564_v48 = vpack.c.bf16 %v1839_v45, %v1838_v41 }
 0x625   :  { %v2546_v18 = vpack.c.bf16 %v1827_v13, %v1826_v63 }
 0x626   :  { %v3432_v57 = vadd.f32 %v1466_v51, %v1465_v55 }
 0x628   :  { %2727 = vtanh.f32 %v3432_v57 }
 0x632   :  { %v2728_v62 = vpop.eup %2727 }
 0x633   :  { %v1469_v12 = vmul.f32 %v2728_v62, %v2726_v59 }
 0x635   :  { %1542 = vmatmul.mubr.f32.vlgmr.msra.gmra.mrb[12].mxu0 %v1469_v12  ;;  %1613 = vmatmul.mubr.f32.vlgmr.msra.gmra.mrb[12].mxu1 %v1469_v12 }
 0x636   :  { %2481 = vmatpush1.bf16.msra.mxu0 %v2850_v22  ;;  %2513 = vmatpush1.bf16.msra.mxu1 %v2859_v25 }
 0x637   :  { %2483 = vmatprep.subr.bf16.mxu0 %v2872_v29  ;;  %2515 = vmatprep.subr.bf16.mxu1 %v2888_v34 }
 0x638   :  { %1718 = vmatprep.mubr.f32.mxu0 %v2761_v3  ;;  %1789 = vmatprep.mubr.f32.mxu1 %v2761_v3 }
 0x63a   :  { %2485 = vmatpush1.bf16.msra.mxu0 %v2890_v35  ;;  %2517 = vmatpush1.bf16.msra.mxu1 %v2900_v38 }
 0x63b   :  { %2487 = vmatprep.subr.bf16.mxu0 %v2913_v42  ;;  %2519 = vmatprep.subr.bf16.mxu1 %v2929_v47 }
 0x63e   :  { %2489 = vmatpush1.bf16.msra.mxu0 %v2939_v50  ;;  %2521 = vmatpush1.bf16.msra.mxu1 %v2952_v54 }
 0x63f   :  { %2491 = vmatprep.subr.bf16.mxu0 %v2965_v58  ;;  %2523 = vmatprep.subr.bf16.mxu1 %v2975_v61 }
 0x642   :  { %2493 = vmatpush1.bf16.msra.mxu0 %v2988_v1  ;;  %2525 = vmatpush1.bf16.msra.mxu1 %v2998_v5 }
 0x643   :  { %2495 = vmatprep.subr.bf16.mxu0 %v3008_v8  ;;  %2527 = vmatprep.subr.bf16.mxu1 %v3018_v11 }
 0x646   :  { %2497 = vmatpush1.bf16.msra.mxu0 %v3031_v15  ;;  %2529 = vmatpush1.bf16.msra.mxu1 %v3041_v19 }
 0x647   :  { %2499 = vmatprep.subr.bf16.mxu0 %v3051_v24  ;;  %2531 = vmatprep.subr.bf16.mxu1 %v3061_v28 }
 0x64a   :  { %2501 = vmatpush1.bf16.msra.mxu0 %v3074_v33  ;;  %2533 = vmatpush1.bf16.msra.mxu1 %v3084_v39 }
 0x64b   :  { %2503 = vmatprep.subr.bf16.mxu0 %v3094_v43  ;;  %2535 = vmatprep.subr.bf16.mxu1 %v3104_v46 }
 0x64e   :  { %2505 = vmatpush1.bf16.msra.mxu0 %v3117_v52  ;;  %2537 = vmatpush1.bf16.msra.mxu1 %v3127_v56 }
 0x64f   :  { %2507 = vmatprep.subr.bf16.mxu0 %v3137_v60  ;;  %2539 = vmatprep.subr.bf16.mxu1 %v3147_v0  ;;  %v1824_v60 = vld [vmem:[%s3539_s4] sm:$0xff]  ;;  %v1825_v0 = vld [vmem:[%s3539_s4 + $0x8] sm:$0xff] }
 0x652   :  { %2509 = vmatpush1.bf16.msra.mxu0 %v3154_v4  ;;  %2541 = vmatpush1.bf16.msra.mxu1 %v3158_v6  ;;  %v2543_v4 = vpack.c.bf16 %v1825_v0, %v1824_v60  ;;  %v2762_v6 = vmov 0.0|0.0  }
 0x653   :  { %2542 = vmatprep.subr.bf16.mxu0 %v2762_v6 }
 0x708   :  { %v1543_v22 = vpop.f32.mrb[12].mxu0  ;;  %v1614_v25 = vpop.f32.mrb[12].mxu1 }
 0x709   :  { %v2578_v29 = vadd.f32 %v1543_v22, %v3210_v14  ;;  %v1545_v34 = vpop.f32.mrb[13].mxu0  ;;  %v1616_v35 = vpop.f32.mrb[13].mxu1  ;;  %v2594_v58 = vadd.f32 %v1614_v25, %v3219_v44 }
 0x70a   :  { %v2579_v38 = vadd.f32 %v1545_v34, %v3212_v16  ;;  %v2595_v50 = vadd.f32 %v1616_v35, %v3216_v37 }
 0x70b   :  { %v1963_v42 = vmul.f32 -1.442695, %v2578_v29 }
 0x70c   :  { %v1964_v47 = vmul.f32 -1.442695, %v2579_v38  ;;  %v1965_v54 = vmul.f32 -1.442695, %v2595_v50 }
 0x70d   :  { %2729 = vpow2.f32 %v1963_v42 }
 0x70e   :  { %2731 = vpow2.f32 %v1964_v47 }
 0x70f   :  { %2733 = vpow2.f32 %v1965_v54 }
 0x710   :  { %2735 = vtanh.f32 %v2594_v58 }
 0x717   :  { %v2730_v61 = vpop.eup %2729 }
 0x718   :  { %v2732_v1 = vpop.eup %2731  ;;  %v1626_v5 = vadd.f32 1.0, %v2730_v61 }
 0x719   :  { %v1632_v8 = vadd.f32 1.0, %v2732_v1  ;;  %v2734_v11 = vpop.eup %2733 }
 0x71a   :  { %2737 = vrcp.f32 %v1626_v5  ;;  %v2736_v15 = vpop.eup %2735  ;;  %v1639_v33 = vadd.f32 1.0, %v2734_v11  ;;  %v1969_v5 = vld [vmem:[%s3540_s5] ss:$0 sm:$0xff] }
 0x71b   :  { %2739 = vrcp.f32 %v1632_v8 }
 0x71c   :  { %2741 = vrcp.f32 %v1639_v33 }
 0x724   :  { %v2738_v19 = vpop.eup %2737 }
 0x725   :  { %v2740_v24 = vpop.eup %2739  ;;  %v1643_v28 = vmul.f32 %v2738_v19, %v2736_v15 }
 0x726   :  { %v1642_v39 = vmul.f32 %v2740_v24, %v3432_v57  ;;  %v2742_v46 = vpop.eup %2741 }
 0x728   :  { %v3472_v43 = vadd.f32 %v1643_v28, %v1642_v39 }
 0x72a   :  { %2743 = vtanh.f32 %v3472_v43 }
 0x734   :  { %v2744_v52 = vpop.eup %2743 }
 0x735   :  { %v1646_v56 = vmul.f32 %v2744_v52, %v2742_v46 }
 0x737   :  { %1719 = vmatmul.mubr.f32.vlgmr.msra.gmra.mrb[14].mxu0 %v1646_v56  ;;  %1790 = vmatmul.mubr.f32.vlgmr.msra.gmra.mrb[14].mxu1 %v1646_v56 }
 0x738   :  { %2544 = vmatpush3.bf16.msra.mxu0 %v2543_v4  ;;  %2019 = vmatprep.mubr.msk.f32.mxu0 %vm2763_vm1, %v2761_v3 }
 0x739   :  { %2545 = vmatprep.subr.bf16.mxu0 %v2762_v6 }
 0x73c   :  { %2547 = vmatpush3.bf16.msra.mxu0 %v2546_v18 }
 0x73d   :  { %2548 = vmatprep.subr.bf16.mxu0 %v2762_v6 }
 0x740   :  { %2550 = vmatpush3.bf16.msra.mxu0 %v2549_v9 }
 0x741   :  { %2551 = vmatprep.subr.bf16.mxu0 %v2762_v6 }
 0x744   :  { %2553 = vmatpush3.bf16.msra.mxu0 %v2552_v23 }
 0x745   :  { %2554 = vmatprep.subr.bf16.mxu0 %v2762_v6 }
 0x748   :  { %2556 = vmatpush3.bf16.msra.mxu0 %v2555_v30 }
 0x749   :  { %2557 = vmatprep.subr.bf16.mxu0 %v2762_v6 }
 0x74c   :  { %2559 = vmatpush3.bf16.msra.mxu0 %v2558_v36 }
 0x74d   :  { %2560 = vmatprep.subr.bf16.mxu0 %v2762_v6 }
 0x750   :  { %2562 = vmatpush3.bf16.msra.mxu0 %v2561_v40 }
 0x751   :  { %2563 = vmatprep.subr.bf16.mxu0 %v2762_v6 }
 0x754   :  { %2565 = vmatpush3.bf16.msra.mxu0 %v2564_v48 }
 0x80a   :  { %v1720_v49 = vpop.f32.mrb[14].mxu0  ;;  %v1791_v51 = vpop.f32.mrb[14].mxu1 }
 0x80b   :  { %v2580_v53 = vadd.f32 %v1720_v49, %v3210_v14  ;;  %v1722_v3 = vpop.f32.mrb[15].mxu0  ;;  %v1793_v55 = vpop.f32.mrb[15].mxu1  ;;  %v2596_v25 = vadd.f32 %v1791_v51, %v3219_v44 }
 0x80c   :  { %v2581_v57 = vadd.f32 %v1722_v3, %v3212_v16  ;;  %v2597_v12 = vadd.f32 %v1793_v55, %v3216_v37 }
 0x80d   :  { %v1966_v59 = vmul.f32 -1.442695, %v2580_v53 }
 0x80e   :  { %v1967_v62 = vmul.f32 -1.442695, %v2581_v57  ;;  %v1968_v22 = vmul.f32 -1.442695, %v2597_v12 }
 0x80f   :  { %2745 = vpow2.f32 %v1966_v59 }
 0x810   :  { %2747 = vpow2.f32 %v1967_v62 }
 0x811   :  { %2749 = vpow2.f32 %v1968_v22 }
 0x812   :  { %2751 = vtanh.f32 %v2596_v25 }
 0x819   :  { %v2746_v29 = vpop.eup %2745 }
 0x81a   :  { %v2748_v34 = vpop.eup %2747  ;;  %v1803_v35 = vadd.f32 1.0, %v2746_v29 }
 0x81b   :  { %v1809_v38 = vadd.f32 1.0, %v2748_v34  ;;  %v2750_v14 = vpop.eup %2749 }
 0x81c   :  { %2753 = vrcp.f32 %v1803_v35  ;;  %v2752_v42 = vpop.eup %2751  ;;  %v1816_v54 = vadd.f32 1.0, %v2750_v14 }
 0x81d   :  { %2755 = vrcp.f32 %v1809_v38 }
 0x81e   :  { %2757 = vrcp.f32 %v1816_v54 }
 0x826   :  { %v2754_v16 = vpop.eup %2753 }
 0x827   :  { %v2756_v47 = vpop.eup %2755  ;;  %v1820_v50 = vmul.f32 %v2754_v16, %v2752_v42 }
 0x828   :  { %v1819_v58 = vmul.f32 %v2756_v47, %v3472_v43  ;;  %v2758_v44 = vpop.eup %2757 }
 0x82a   :  { %v1821_v37 = vadd.f32 %v1820_v50, %v1819_v58 }
 0x82c   :  { %2759 = vtanh.f32 %v1821_v37 }
 0x836   :  { %v2760_v61 = vpop.eup %2759 }
 0x837   :  { %v1823_v1 = vmul.f32 %v2760_v61, %v2758_v44 }
 0x839   :  { %2020 = vmatmul.mubr.f32.vlgmr.msra.gmra.mrb[16].mxu0 %v1823_v1 }
 0x90c   :  { %v1913_v8 = vpop.f32.mrb[16].mxu0 }
 0x90d   :  { %v1914_v11 = vadd.f32 %v1969_v5, %v1913_v8  ;;  %v2021_v15 = vpop.f32.mrb[17].mxu0 }
 0x90f   :  { %1917 = vst [vmem:[%s3541_s6] sm:$0xff] %v1914_v11 }

</bundles_post_ra>
